<compile_context>
chip_gen: v7x
topology: tpu7x:2x2x1
jax: 0.10.0
libtpu: 0.0.40
codegen_flags: <defaults>
</compile_context>

<pallas_src>
import math

import jax
import jax.numpy as jnp
from jax.experimental import pallas as pl
from jax.experimental.pallas import tpu as pltpu

N_HEADS = 8
EPS = 1e-6


def _encoder_kernel(x_ref, wqkv_ref, bqkv_ref, wo_ref, bo_ref,
                    w13_ref, w2_ref, out_ref):
    """Bt batch elements per grid step; everything lives in VMEM."""
    Bt, S, D = x_ref.shape
    hd = D // N_HEADS
    rows = Bt * S
    Hff = w2_ref.shape[0]
    cd = wqkv_ref.dtype                      # compute dtype for the MXU (bf16)

    # Fold (Bt, S) into the row axis (layout-free: last dim unchanged).
    x = x_ref[...].reshape(rows, D)                                   # f32

    # ---- attention_norm (RMSNorm): weight is folded into wqkv in the
    #      wrapper, so only the normalization itself happens here ----
    xn = x * jax.lax.rsqrt(jnp.mean(x * x, axis=-1, keepdims=True) + EPS)
    xn_c = xn.astype(cd)

    # ---- fused q/k/v projection (scale & norm weight already folded) ----
    qkv = jnp.dot(xn_c, wqkv_ref[...],
                  preferred_element_type=jnp.float32) + bqkv_ref[...]  # (rows, 3D)
    q3 = qkv[:, :D].reshape(Bt, S, D).astype(cd)
    k3 = qkv[:, D:2 * D].reshape(Bt, S, D).astype(cd)
    v3 = qkv[:, 2 * D:].reshape(Bt, S, D).astype(cd)

    wo = wo_ref[...]                                                  # (D, D) bf16

    # ---- multi-head attention, batched over Bt per head; out_proj is
    #      distributed over heads (removes the 8-way concatenate) ----
    attn = jnp.zeros((rows, D), jnp.float32)
    for h in range(N_HEADS):
        lo, hi = h * hd, (h + 1) * hd
        qh = q3[:, :, lo:hi]                                          # (Bt, S, hd)
        kh = k3[:, :, lo:hi]
        vh = v3[:, :, lo:hi]
        s = jnp.einsum('bqd,bkd->bqk', qh, kh,
                       preferred_element_type=jnp.float32)            # (Bt, S, S)
        s = s - jnp.max(s, axis=-1, keepdims=True)
        p = jnp.exp(s)
        p = p * pl.reciprocal(jnp.sum(p, axis=-1, keepdims=True), approx=True)
        oh = jnp.einsum('bqk,bkd->bqd', p.astype(cd), vh,
                        preferred_element_type=jnp.float32)           # (Bt, S, hd)
        attn = attn + jnp.dot(oh.reshape(rows, hd).astype(cd), wo[lo:hi, :],
                              preferred_element_type=jnp.float32)
    attn = attn + bo_ref[...]

    h1 = x + attn                                                     # residual 1

    # ---- ffw_norm (RMSNorm): weight folded into w13 in the wrapper ----
    hn = h1 * jax.lax.rsqrt(jnp.mean(h1 * h1, axis=-1, keepdims=True) + EPS)
    hn_c = hn.astype(cd)

    # ---- FeedForward: w2( silu(w1(x)) * w3(x) ), w1/w3 fused ----
    g = jnp.dot(hn_c, w13_ref[...],
                preferred_element_type=jnp.float32)                   # (rows, 2*Hff)
    a = g[:, :Hff]
    b = g[:, Hff:]
    gated = (a * jax.nn.sigmoid(a)) * b
    ff = jnp.dot(gated.astype(cd), w2_ref[...],
                 preferred_element_type=jnp.float32)                  # (rows, D)

    out_ref[...] = (h1 + ff).reshape(Bt, S, D)                        # residual 2


def _pick_block_b(B, S, max_rows=1024):
    """Largest Bt dividing B with Bt*S <= max_rows, keeping >=2 grid steps
    when possible (so both v7x TensorCores get work)."""
    best = 1
    for d in range(1, B + 1):
        if B % d != 0 or d * S > max_rows:
            continue
        if B // d >= 2:
            best = max(best, d)
    return best


def transformer_encoder(x, params, *, block_b=None, compute_dtype=jnp.bfloat16):
    """x: (B, S, D) float32. params: PyTorch-layout f32 weights (see make_params)."""
    B, S, D = x.shape
    hd = D // N_HEADS
    scale = 1.0 / math.sqrt(hd)
    Hff = params["w1"].shape[0]
    cd = compute_dtype

    # nn.Linear / nn.MultiheadAttention store (out, in); pre-transpose so the
    # kernel only sees (K, N).  Fold the softmax scale into the Q projection
    # and the RMSNorm weights (diag) into the downstream projections (exact).
    wq, wk, wv = jnp.split(params["in_proj_w"], 3, axis=0)            # (D, D) each
    bq, bk, bv = jnp.split(params["in_proj_b"], 3, axis=0)            # (D,) each
    an = params["an_w"].astype(jnp.float32)[:, None]                  # (D, 1)
    fn = params["fn_w"].astype(jnp.float32)[:, None]                  # (D, 1)

    wqkv_t = jnp.concatenate(
        [an * wq.T * scale, an * wk.T, an * wv.T], axis=1).astype(cd)  # (D, 3D)
    bqkv = jnp.concatenate(
        [bq * scale, bk, bv]).reshape(1, 3 * D).astype(jnp.float32)    # (1, 3D)
    wo_t = params["out_proj_w"].T.astype(cd)                           # (D, D)
    bo2 = params["out_proj_b"].reshape(1, D).astype(jnp.float32)       # (1, D)
    w13_t = jnp.concatenate(
        [fn * params["w1"].T, fn * params["w3"].T], axis=1).astype(cd)  # (D, 2*Hff)
    w2_t = params["w2"].T.astype(cd)                                   # (Hff, D)

    if block_b is None:
        block_b = _pick_block_b(B, S)
    assert B % block_b == 0, (B, block_b)
    grid = (B // block_b,)

    full = lambda shape: pl.BlockSpec(shape, lambda b: tuple(0 for _ in shape))

    grid_spec = pltpu.PrefetchScalarGridSpec(
        num_scalar_prefetch=0,
        grid=grid,
        in_specs=[
            pl.BlockSpec((block_b, S, D), lambda b: (b, 0, 0)),  # x
            full((D, 3 * D)),     # fused qkv weight (norm & scale folded)
            full((1, 3 * D)),     # fused qkv bias   (scale folded)
            full((D, D)),         # out_proj weight
            full((1, D)),         # out_proj bias
            full((D, 2 * Hff)),   # fused w1|w3 weight (ffw_norm folded)
            full((Hff, D)),       # w2 weight
        ],
        out_specs=pl.BlockSpec((block_b, S, D), lambda b: (b, 0, 0)),
    )

    # Advisory cost estimate so XLA schedules the custom call sensibly.
    rows = B * S
    flops = 2 * rows * (4 * D * D + 3 * D * Hff) + 4 * B * S * S * D
    transcendentals = B * N_HEADS * S * S + rows * Hff + 2 * rows + B * N_HEADS * S
    bytes_accessed = (2 * rows * D * 4                        # x in + out (f32)
                      + (4 * D * D + 3 * D * Hff) * 2         # bf16 weights
                      + (3 * D + D) * 4)                      # biases (f32)
    cost = pl.CostEstimate(flops=int(flops),
                           transcendentals=int(transcendentals),
                           bytes_accessed=int(bytes_accessed))

    return pl.pallas_call(
        _encoder_kernel,
        out_shape=jax.ShapeDtypeStruct((B, S, D), jnp.float32),
        grid_spec=grid_spec,
        compiler_params=pltpu.CompilerParams(
            dimension_semantics=("parallel",),
            vmem_limit_bytes=32 * 1024 * 1024),
        cost_estimate=cost,
    )(x, wqkv_t, bqkv, wo_t, bo2, w13_t, w2_t)


def make_params(key, feature_dim, hidden_dim):
    """Deterministic synthetic parameters matching the PyTorch module shapes
    (PyTorch (out, in) layout, float32)."""
    D = feature_dim
    ff_h = int(2 * hidden_dim / 3)
    ff_h = 256 * ((ff_h + 256 - 1) // 256)          # multiple_of = 256

    ks = jax.random.split(key, 8)
    init = lambda k, shape, s: (s * jax.random.normal(k, shape)).astype(jnp.float32)

    return {
        # nn.MultiheadAttention: in_proj_weight (3D, D), in_proj_bias (3D,),
        #                        out_proj.weight (D, D), out_proj.bias (D,)
        "in_proj_w": init(ks[0], (3 * D, D), 0.05),
        "in_proj_b": init(ks[1], (3 * D,), 0.05),
        "out_proj_w": init(ks[2], (D, D), 0.05),
        "out_proj_b": init(ks[3], (D,), 0.05),
        # FeedForward (bias=False): w1 (H, D), w2 (D, H), w3 (H, D)
        "w1": init(ks[4], (ff_h, D), 0.05),
        "w2": init(ks[5], (D, ff_h), 0.05),
        "w3": init(ks[6], (ff_h, D), 0.05),
        # RMSNorm weights (ones in the module; perturb one slightly).
        "an_w": (jnp.ones((D,)) + 0.01 * jax.random.normal(ks[7], (D,))).astype(jnp.float32),
        "fn_w": jnp.ones((D,), jnp.float32),
    }


def reference_encoder(x, p):
    """Pure-JAX f32 reference mirroring the PyTorch forward (eval mode)."""
    B, S, D = x.shape
    hd = D // N_HEADS
    scale = 1.0 / math.sqrt(hd)

    def rmsnorm(v, w):
        return v * jax.lax.rsqrt(jnp.mean(v * v, -1, keepdims=True) + EPS) * w

    xn = rmsnorm(x, p["an_w"])
    qkv = xn @ p["in_proj_w"].T + p["in_proj_b"]
    q, k, v = jnp.split(qkv, 3, axis=-1)
    q = q.reshape(B, S, N_HEADS, hd).transpose(0, 2, 1, 3) * scale
    k = k.reshape(B, S, N_HEADS, hd).transpose(0, 2, 1, 3)
    v = v.reshape(B, S, N_HEADS, hd).transpose(0, 2, 1, 3)
    s = jnp.einsum("bhqd,bhkd->bhqk", q, k)
    pw = jax.nn.softmax(s, axis=-1)
    attn = jnp.einsum("bhqk,bhkd->bhqd", pw, v).transpose(0, 2, 1, 3).reshape(B, S, D)
    attn = attn @ p["out_proj_w"].T + p["out_proj_b"]
    h = x + attn
    hn = rmsnorm(h, p["fn_w"])
    a = hn @ p["w1"].T
    ff = ((a * jax.nn.sigmoid(a)) * (hn @ p["w3"].T)) @ p["w2"].T
    return h + ff


if __name__ == "__main__":
    B, S, D = 4, 8, 32          # feature_dim=32 (8 heads x head_dim 4)
    hidden_dim = 32             # -> FFN hidden rounded up to 256

    key = jax.random.PRNGKey(0)
    k_x, k_p = jax.random.split(key)
    x = jax.random.normal(k_x, (B, S, D), dtype=jnp.float32)
    params = make_params(k_p, D, hidden_dim)

    out = transformer_encoder(x, params)
    out = jax.block_until_ready(out)

    ref = reference_encoder(x, params)
    assert out.shape == (B, S, D)
    err = float(jnp.max(jnp.abs(out - ref)))
    # bf16 MXU inputs + approx reciprocal => slightly looser tolerance vs f32 ref.
    assert jnp.allclose(out, ref, rtol=2e-2, atol=2e-2), f"max abs err {err}"

    print("KERNEL_OK")
</pallas_src>

<mosaic_0001>
module attributes {stable_mosaic.version = 11 : i64} {
  func.func @_encoder_kernel(%arg0: i32, %arg1: memref<2x8x32xf32, #tpu.memory_space<vmem>>, %arg2: memref<32x96xbf16, #tpu.memory_space<vmem>>, %arg3: memref<1x96xf32, #tpu.memory_space<vmem>>, %arg4: memref<32x32xbf16, #tpu.memory_space<vmem>>, %arg5: memref<1x32xf32, #tpu.memory_space<vmem>>, %arg6: memref<32x512xbf16, #tpu.memory_space<vmem>>, %arg7: memref<256x32xbf16, #tpu.memory_space<vmem>>, %arg8: memref<2x8x32xf32, #tpu.memory_space<vmem>>) attributes {dimension_semantics = [#tpu.dimension_semantics<parallel>], iteration_bounds = array<i64: 2>, scalar_prefetch = 0 : i64, scratch_operands = 0 : i64, tpu.core_type = #tpu.core_type<tc>, window_params = [{transform_indices = @transform_0, window_bounds = array<i64: 2, 8, 32>}, {pipeline_mode = #tpu.pipeline_mode<synchronous>, transform_indices = @transform_1, window_bounds = array<i64: 32, 96>}, {pipeline_mode = #tpu.pipeline_mode<synchronous>, transform_indices = @transform_2, window_bounds = array<i64: 1, 96>}, {pipeline_mode = #tpu.pipeline_mode<synchronous>, transform_indices = @transform_3, window_bounds = array<i64: 32, 32>}, {pipeline_mode = #tpu.pipeline_mode<synchronous>, transform_indices = @transform_4, window_bounds = array<i64: 1, 32>}, {pipeline_mode = #tpu.pipeline_mode<synchronous>, transform_indices = @transform_5, window_bounds = array<i64: 32, 512>}, {pipeline_mode = #tpu.pipeline_mode<synchronous>, transform_indices = @transform_6, window_bounds = array<i64: 256, 32>}, {transform_indices = @transform_7, window_bounds = array<i64: 2, 8, 32>}]} {
    %c0 = arith.constant 0 : index
    %c0_0 = arith.constant 0 : index
    %c0_1 = arith.constant 0 : index
    %0 = vector.load %arg1[%c0, %c0_0, %c0_1] : memref<2x8x32xf32, #tpu.memory_space<vmem>>, vector<2x8x32xf32>
    %1 = vector.shape_cast %0 : vector<2x8x32xf32> to vector<16x32xf32>
    %2 = arith.mulf %1, %1 : vector<16x32xf32>
    %cst = arith.constant dense<0.000000e+00> : vector<16xf32>
    %3 = vector.multi_reduction <add>, %2, %cst [1] : vector<16x32xf32> to vector<16xf32>
    %4 = vector.shape_cast %3 : vector<16xf32> to vector<16x1xf32>
    %cst_2 = arith.constant 3.200000e+01 : f32
    %5 = vector.broadcast %cst_2 : f32 to vector<16x1xf32>
    %6 = arith.divf %4, %5 : vector<16x1xf32>
    %cst_3 = arith.constant 9.99999997E-7 : f32
    %7 = vector.broadcast %cst_3 : f32 to vector<16x1xf32>
    %8 = arith.addf %6, %7 : vector<16x1xf32>
    %9 = math.rsqrt %8 : vector<16x1xf32>
    %10 = vector.broadcast %9 : vector<16x1xf32> to vector<16x32xf32>
    %11 = arith.mulf %1, %10 : vector<16x32xf32>
    %12 = arith.truncf %11 : vector<16x32xf32> to vector<16x32xbf16>
    %c0_4 = arith.constant 0 : index
    %c0_5 = arith.constant 0 : index
    %13 = vector.load %arg2[%c0_4, %c0_5] : memref<32x96xbf16, #tpu.memory_space<vmem>>, vector<32x96xbf16>
    %cst_6 = arith.constant dense<0.000000e+00> : vector<16x96xf32>
    %14 = tpu.matmul %12, %13, %cst_6 {dimension_numbers = #tpu.dot_dimension_numbers<[1], [0], [0], [1], [0, 0, 1, 1], [], []>} : vector<16x32xbf16>, vector<32x96xbf16>, vector<16x96xf32> -> vector<16x96xf32>
    %c0_7 = arith.constant 0 : index
    %c0_8 = arith.constant 0 : index
    %15 = vector.load %arg3[%c0_7, %c0_8] : memref<1x96xf32, #tpu.memory_space<vmem>>, vector<1x96xf32>
    %16 = vector.broadcast %15 : vector<1x96xf32> to vector<16x96xf32>
    %17 = arith.addf %14, %16 : vector<16x96xf32>
    %18 = vector.extract_strided_slice %17 {offsets = [0, 0], sizes = [16, 32], strides = [1, 1]} : vector<16x96xf32> to vector<16x32xf32>
    %19 = vector.shape_cast %18 : vector<16x32xf32> to vector<2x8x32xf32>
    %20 = arith.truncf %19 : vector<2x8x32xf32> to vector<2x8x32xbf16>
    %21 = vector.extract_strided_slice %17 {offsets = [0, 32], sizes = [16, 32], strides = [1, 1]} : vector<16x96xf32> to vector<16x32xf32>
    %22 = vector.shape_cast %21 : vector<16x32xf32> to vector<2x8x32xf32>
    %23 = arith.truncf %22 : vector<2x8x32xf32> to vector<2x8x32xbf16>
    %24 = vector.extract_strided_slice %17 {offsets = [0, 64], sizes = [16, 32], strides = [1, 1]} : vector<16x96xf32> to vector<16x32xf32>
    %25 = vector.shape_cast %24 : vector<16x32xf32> to vector<2x8x32xf32>
    %26 = arith.truncf %25 : vector<2x8x32xf32> to vector<2x8x32xbf16>
    %c0_9 = arith.constant 0 : index
    %c0_10 = arith.constant 0 : index
    %27 = vector.load %arg4[%c0_9, %c0_10] : memref<32x32xbf16, #tpu.memory_space<vmem>>, vector<32x32xbf16>
    %cst_11 = arith.constant 0.000000e+00 : f32
    %28 = vector.broadcast %cst_11 : f32 to vector<16x32xf32>
    %29 = vector.extract_strided_slice %20 {offsets = [0, 0, 0], sizes = [2, 8, 4], strides = [1, 1, 1]} : vector<2x8x32xbf16> to vector<2x8x4xbf16>
    %30 = vector.extract_strided_slice %23 {offsets = [0, 0, 0], sizes = [2, 8, 4], strides = [1, 1, 1]} : vector<2x8x32xbf16> to vector<2x8x4xbf16>
    %31 = vector.extract_strided_slice %26 {offsets = [0, 0, 0], sizes = [2, 8, 4], strides = [1, 1, 1]} : vector<2x8x32xbf16> to vector<2x8x4xbf16>
    "tpu.trace_start"() <{level = 10 : i32, message = "bqd,bkd->bqk"}> : () -> ()
    %cst_12 = arith.constant dense<0.000000e+00> : vector<2x8x8xf32>
    %32 = tpu.matmul %29, %30, %cst_12 {dimension_numbers = #tpu.dot_dimension_numbers<[2], [2], [1], [1], [0, 0, 0, 1, 1, 1], [0], [0]>} : vector<2x8x4xbf16>, vector<2x8x4xbf16>, vector<2x8x8xf32> -> vector<2x8x8xf32>
    "tpu.trace_stop"() : () -> ()
    %cst_13 = arith.constant dense<0xFF800000> : vector<2x8xf32>
    %33 = vector.multi_reduction <maximumf>, %32, %cst_13 [2] : vector<2x8x8xf32> to vector<2x8xf32>
    %34 = vector.shape_cast %33 : vector<2x8xf32> to vector<2x8x1xf32>
    %35 = vector.broadcast %34 : vector<2x8x1xf32> to vector<2x8x8xf32>
    %36 = arith.subf %32, %35 : vector<2x8x8xf32>
    %37 = math.exp %36 : vector<2x8x8xf32>
    %cst_14 = arith.constant dense<0.000000e+00> : vector<2x8xf32>
    %38 = vector.multi_reduction <add>, %37, %cst_14 [2] : vector<2x8x8xf32> to vector<2x8xf32>
    %39 = vector.shape_cast %38 : vector<2x8xf32> to vector<2x8x1xf32>
    %40 = tpu.reciprocal %39 {approx = true} : vector<2x8x1xf32> -> vector<2x8x1xf32>
    %41 = vector.broadcast %40 : vector<2x8x1xf32> to vector<2x8x8xf32>
    %42 = arith.mulf %37, %41 : vector<2x8x8xf32>
    %43 = arith.truncf %42 : vector<2x8x8xf32> to vector<2x8x8xbf16>
    "tpu.trace_start"() <{level = 10 : i32, message = "bqk,bkd->bqd"}> : () -> ()
    %cst_15 = arith.constant dense<0.000000e+00> : vector<2x8x4xf32>
    %44 = tpu.matmul %43, %31, %cst_15 {dimension_numbers = #tpu.dot_dimension_numbers<[2], [1], [1], [2], [0, 0, 0, 1, 1, 2], [0], [0]>} : vector<2x8x8xbf16>, vector<2x8x4xbf16>, vector<2x8x4xf32> -> vector<2x8x4xf32>
    "tpu.trace_stop"() : () -> ()
    %45 = vector.shape_cast %44 : vector<2x8x4xf32> to vector<16x4xf32>
    %46 = arith.truncf %45 : vector<16x4xf32> to vector<16x4xbf16>
    %47 = vector.extract_strided_slice %27 {offsets = [0, 0], sizes = [4, 32], strides = [1, 1]} : vector<32x32xbf16> to vector<4x32xbf16>
    %cst_16 = arith.constant dense<0.000000e+00> : vector<16x32xf32>
    %48 = tpu.matmul %46, %47, %cst_16 {dimension_numbers = #tpu.dot_dimension_numbers<[1], [0], [0], [1], [0, 0, 1, 1], [], []>} : vector<16x4xbf16>, vector<4x32xbf16>, vector<16x32xf32> -> vector<16x32xf32>
    %49 = arith.addf %28, %48 : vector<16x32xf32>
    %50 = vector.extract_strided_slice %20 {offsets = [0, 0, 4], sizes = [2, 8, 4], strides = [1, 1, 1]} : vector<2x8x32xbf16> to vector<2x8x4xbf16>
    %51 = vector.extract_strided_slice %23 {offsets = [0, 0, 4], sizes = [2, 8, 4], strides = [1, 1, 1]} : vector<2x8x32xbf16> to vector<2x8x4xbf16>
    %52 = vector.extract_strided_slice %26 {offsets = [0, 0, 4], sizes = [2, 8, 4], strides = [1, 1, 1]} : vector<2x8x32xbf16> to vector<2x8x4xbf16>
    "tpu.trace_start"() <{level = 10 : i32, message = "bqd,bkd->bqk"}> : () -> ()
    %cst_17 = arith.constant dense<0.000000e+00> : vector<2x8x8xf32>
    %53 = tpu.matmul %50, %51, %cst_17 {dimension_numbers = #tpu.dot_dimension_numbers<[2], [2], [1], [1], [0, 0, 0, 1, 1, 1], [0], [0]>} : vector<2x8x4xbf16>, vector<2x8x4xbf16>, vector<2x8x8xf32> -> vector<2x8x8xf32>
    "tpu.trace_stop"() : () -> ()
    %cst_18 = arith.constant dense<0xFF800000> : vector<2x8xf32>
    %54 = vector.multi_reduction <maximumf>, %53, %cst_18 [2] : vector<2x8x8xf32> to vector<2x8xf32>
    %55 = vector.shape_cast %54 : vector<2x8xf32> to vector<2x8x1xf32>
    %56 = vector.broadcast %55 : vector<2x8x1xf32> to vector<2x8x8xf32>
    %57 = arith.subf %53, %56 : vector<2x8x8xf32>
    %58 = math.exp %57 : vector<2x8x8xf32>
    %cst_19 = arith.constant dense<0.000000e+00> : vector<2x8xf32>
    %59 = vector.multi_reduction <add>, %58, %cst_19 [2] : vector<2x8x8xf32> to vector<2x8xf32>
    %60 = vector.shape_cast %59 : vector<2x8xf32> to vector<2x8x1xf32>
    %61 = tpu.reciprocal %60 {approx = true} : vector<2x8x1xf32> -> vector<2x8x1xf32>
    %62 = vector.broadcast %61 : vector<2x8x1xf32> to vector<2x8x8xf32>
    %63 = arith.mulf %58, %62 : vector<2x8x8xf32>
    %64 = arith.truncf %63 : vector<2x8x8xf32> to vector<2x8x8xbf16>
    "tpu.trace_start"() <{level = 10 : i32, message = "bqk,bkd->bqd"}> : () -> ()
    %cst_20 = arith.constant dense<0.000000e+00> : vector<2x8x4xf32>
    %65 = tpu.matmul %64, %52, %cst_20 {dimension_numbers = #tpu.dot_dimension_numbers<[2], [1], [1], [2], [0, 0, 0, 1, 1, 2], [0], [0]>} : vector<2x8x8xbf16>, vector<2x8x4xbf16>, vector<2x8x4xf32> -> vector<2x8x4xf32>
    "tpu.trace_stop"() : () -> ()
    %66 = vector.shape_cast %65 : vector<2x8x4xf32> to vector<16x4xf32>
    %67 = arith.truncf %66 : vector<16x4xf32> to vector<16x4xbf16>
    %68 = vector.extract_strided_slice %27 {offsets = [4, 0], sizes = [4, 32], strides = [1, 1]} : vector<32x32xbf16> to vector<4x32xbf16>
    %cst_21 = arith.constant dense<0.000000e+00> : vector<16x32xf32>
    %69 = tpu.matmul %67, %68, %cst_21 {dimension_numbers = #tpu.dot_dimension_numbers<[1], [0], [0], [1], [0, 0, 1, 1], [], []>} : vector<16x4xbf16>, vector<4x32xbf16>, vector<16x32xf32> -> vector<16x32xf32>
    %70 = arith.addf %49, %69 : vector<16x32xf32>
    %71 = vector.extract_strided_slice %20 {offsets = [0, 0, 8], sizes = [2, 8, 4], strides = [1, 1, 1]} : vector<2x8x32xbf16> to vector<2x8x4xbf16>
    %72 = vector.extract_strided_slice %23 {offsets = [0, 0, 8], sizes = [2, 8, 4], strides = [1, 1, 1]} : vector<2x8x32xbf16> to vector<2x8x4xbf16>
    %73 = vector.extract_strided_slice %26 {offsets = [0, 0, 8], sizes = [2, 8, 4], strides = [1, 1, 1]} : vector<2x8x32xbf16> to vector<2x8x4xbf16>
    "tpu.trace_start"() <{level = 10 : i32, message = "bqd,bkd->bqk"}> : () -> ()
    %cst_22 = arith.constant dense<0.000000e+00> : vector<2x8x8xf32>
    %74 = tpu.matmul %71, %72, %cst_22 {dimension_numbers = #tpu.dot_dimension_numbers<[2], [2], [1], [1], [0, 0, 0, 1, 1, 1], [0], [0]>} : vector<2x8x4xbf16>, vector<2x8x4xbf16>, vector<2x8x8xf32> -> vector<2x8x8xf32>
    "tpu.trace_stop"() : () -> ()
    %cst_23 = arith.constant dense<0xFF800000> : vector<2x8xf32>
    %75 = vector.multi_reduction <maximumf>, %74, %cst_23 [2] : vector<2x8x8xf32> to vector<2x8xf32>
    %76 = vector.shape_cast %75 : vector<2x8xf32> to vector<2x8x1xf32>
    %77 = vector.broadcast %76 : vector<2x8x1xf32> to vector<2x8x8xf32>
    %78 = arith.subf %74, %77 : vector<2x8x8xf32>
    %79 = math.exp %78 : vector<2x8x8xf32>
    %cst_24 = arith.constant dense<0.000000e+00> : vector<2x8xf32>
    %80 = vector.multi_reduction <add>, %79, %cst_24 [2] : vector<2x8x8xf32> to vector<2x8xf32>
    %81 = vector.shape_cast %80 : vector<2x8xf32> to vector<2x8x1xf32>
    %82 = tpu.reciprocal %81 {approx = true} : vector<2x8x1xf32> -> vector<2x8x1xf32>
    %83 = vector.broadcast %82 : vector<2x8x1xf32> to vector<2x8x8xf32>
    %84 = arith.mulf %79, %83 : vector<2x8x8xf32>
    %85 = arith.truncf %84 : vector<2x8x8xf32> to vector<2x8x8xbf16>
    "tpu.trace_start"() <{level = 10 : i32, message = "bqk,bkd->bqd"}> : () -> ()
    %cst_25 = arith.constant dense<0.000000e+00> : vector<2x8x4xf32>
    %86 = tpu.matmul %85, %73, %cst_25 {dimension_numbers = #tpu.dot_dimension_numbers<[2], [1], [1], [2], [0, 0, 0, 1, 1, 2], [0], [0]>} : vector<2x8x8xbf16>, vector<2x8x4xbf16>, vector<2x8x4xf32> -> vector<2x8x4xf32>
    "tpu.trace_stop"() : () -> ()
    %87 = vector.shape_cast %86 : vector<2x8x4xf32> to vector<16x4xf32>
    %88 = arith.truncf %87 : vector<16x4xf32> to vector<16x4xbf16>
    %89 = vector.extract_strided_slice %27 {offsets = [8, 0], sizes = [4, 32], strides = [1, 1]} : vector<32x32xbf16> to vector<4x32xbf16>
    %cst_26 = arith.constant dense<0.000000e+00> : vector<16x32xf32>
    %90 = tpu.matmul %88, %89, %cst_26 {dimension_numbers = #tpu.dot_dimension_numbers<[1], [0], [0], [1], [0, 0, 1, 1], [], []>} : vector<16x4xbf16>, vector<4x32xbf16>, vector<16x32xf32> -> vector<16x32xf32>
    %91 = arith.addf %70, %90 : vector<16x32xf32>
    %92 = vector.extract_strided_slice %20 {offsets = [0, 0, 12], sizes = [2, 8, 4], strides = [1, 1, 1]} : vector<2x8x32xbf16> to vector<2x8x4xbf16>
    %93 = vector.extract_strided_slice %23 {offsets = [0, 0, 12], sizes = [2, 8, 4], strides = [1, 1, 1]} : vector<2x8x32xbf16> to vector<2x8x4xbf16>
    %94 = vector.extract_strided_slice %26 {offsets = [0, 0, 12], sizes = [2, 8, 4], strides = [1, 1, 1]} : vector<2x8x32xbf16> to vector<2x8x4xbf16>
    "tpu.trace_start"() <{level = 10 : i32, message = "bqd,bkd->bqk"}> : () -> ()
    %cst_27 = arith.constant dense<0.000000e+00> : vector<2x8x8xf32>
    %95 = tpu.matmul %92, %93, %cst_27 {dimension_numbers = #tpu.dot_dimension_numbers<[2], [2], [1], [1], [0, 0, 0, 1, 1, 1], [0], [0]>} : vector<2x8x4xbf16>, vector<2x8x4xbf16>, vector<2x8x8xf32> -> vector<2x8x8xf32>
    "tpu.trace_stop"() : () -> ()
    %cst_28 = arith.constant dense<0xFF800000> : vector<2x8xf32>
    %96 = vector.multi_reduction <maximumf>, %95, %cst_28 [2] : vector<2x8x8xf32> to vector<2x8xf32>
    %97 = vector.shape_cast %96 : vector<2x8xf32> to vector<2x8x1xf32>
    %98 = vector.broadcast %97 : vector<2x8x1xf32> to vector<2x8x8xf32>
    %99 = arith.subf %95, %98 : vector<2x8x8xf32>
    %100 = math.exp %99 : vector<2x8x8xf32>
    %cst_29 = arith.constant dense<0.000000e+00> : vector<2x8xf32>
    %101 = vector.multi_reduction <add>, %100, %cst_29 [2] : vector<2x8x8xf32> to vector<2x8xf32>
    %102 = vector.shape_cast %101 : vector<2x8xf32> to vector<2x8x1xf32>
    %103 = tpu.reciprocal %102 {approx = true} : vector<2x8x1xf32> -> vector<2x8x1xf32>
    %104 = vector.broadcast %103 : vector<2x8x1xf32> to vector<2x8x8xf32>
    %105 = arith.mulf %100, %104 : vector<2x8x8xf32>
    %106 = arith.truncf %105 : vector<2x8x8xf32> to vector<2x8x8xbf16>
    "tpu.trace_start"() <{level = 10 : i32, message = "bqk,bkd->bqd"}> : () -> ()
    %cst_30 = arith.constant dense<0.000000e+00> : vector<2x8x4xf32>
    %107 = tpu.matmul %106, %94, %cst_30 {dimension_numbers = #tpu.dot_dimension_numbers<[2], [1], [1], [2], [0, 0, 0, 1, 1, 2], [0], [0]>} : vector<2x8x8xbf16>, vector<2x8x4xbf16>, vector<2x8x4xf32> -> vector<2x8x4xf32>
    "tpu.trace_stop"() : () -> ()
    %108 = vector.shape_cast %107 : vector<2x8x4xf32> to vector<16x4xf32>
    %109 = arith.truncf %108 : vector<16x4xf32> to vector<16x4xbf16>
    %110 = vector.extract_strided_slice %27 {offsets = [12, 0], sizes = [4, 32], strides = [1, 1]} : vector<32x32xbf16> to vector<4x32xbf16>
    %cst_31 = arith.constant dense<0.000000e+00> : vector<16x32xf32>
    %111 = tpu.matmul %109, %110, %cst_31 {dimension_numbers = #tpu.dot_dimension_numbers<[1], [0], [0], [1], [0, 0, 1, 1], [], []>} : vector<16x4xbf16>, vector<4x32xbf16>, vector<16x32xf32> -> vector<16x32xf32>
    %112 = arith.addf %91, %111 : vector<16x32xf32>
    %113 = vector.extract_strided_slice %20 {offsets = [0, 0, 16], sizes = [2, 8, 4], strides = [1, 1, 1]} : vector<2x8x32xbf16> to vector<2x8x4xbf16>
    %114 = vector.extract_strided_slice %23 {offsets = [0, 0, 16], sizes = [2, 8, 4], strides = [1, 1, 1]} : vector<2x8x32xbf16> to vector<2x8x4xbf16>
    %115 = vector.extract_strided_slice %26 {offsets = [0, 0, 16], sizes = [2, 8, 4], strides = [1, 1, 1]} : vector<2x8x32xbf16> to vector<2x8x4xbf16>
    "tpu.trace_start"() <{level = 10 : i32, message = "bqd,bkd->bqk"}> : () -> ()
    %cst_32 = arith.constant dense<0.000000e+00> : vector<2x8x8xf32>
    %116 = tpu.matmul %113, %114, %cst_32 {dimension_numbers = #tpu.dot_dimension_numbers<[2], [2], [1], [1], [0, 0, 0, 1, 1, 1], [0], [0]>} : vector<2x8x4xbf16>, vector<2x8x4xbf16>, vector<2x8x8xf32> -> vector<2x8x8xf32>
    "tpu.trace_stop"() : () -> ()
    %cst_33 = arith.constant dense<0xFF800000> : vector<2x8xf32>
    %117 = vector.multi_reduction <maximumf>, %116, %cst_33 [2] : vector<2x8x8xf32> to vector<2x8xf32>
    %118 = vector.shape_cast %117 : vector<2x8xf32> to vector<2x8x1xf32>
    %119 = vector.broadcast %118 : vector<2x8x1xf32> to vector<2x8x8xf32>
    %120 = arith.subf %116, %119 : vector<2x8x8xf32>
    %121 = math.exp %120 : vector<2x8x8xf32>
    %cst_34 = arith.constant dense<0.000000e+00> : vector<2x8xf32>
    %122 = vector.multi_reduction <add>, %121, %cst_34 [2] : vector<2x8x8xf32> to vector<2x8xf32>
    %123 = vector.shape_cast %122 : vector<2x8xf32> to vector<2x8x1xf32>
    %124 = tpu.reciprocal %123 {approx = true} : vector<2x8x1xf32> -> vector<2x8x1xf32>
    %125 = vector.broadcast %124 : vector<2x8x1xf32> to vector<2x8x8xf32>
    %126 = arith.mulf %121, %125 : vector<2x8x8xf32>
    %127 = arith.truncf %126 : vector<2x8x8xf32> to vector<2x8x8xbf16>
    "tpu.trace_start"() <{level = 10 : i32, message = "bqk,bkd->bqd"}> : () -> ()
    %cst_35 = arith.constant dense<0.000000e+00> : vector<2x8x4xf32>
    %128 = tpu.matmul %127, %115, %cst_35 {dimension_numbers = #tpu.dot_dimension_numbers<[2], [1], [1], [2], [0, 0, 0, 1, 1, 2], [0], [0]>} : vector<2x8x8xbf16>, vector<2x8x4xbf16>, vector<2x8x4xf32> -> vector<2x8x4xf32>
    "tpu.trace_stop"() : () -> ()
    %129 = vector.shape_cast %128 : vector<2x8x4xf32> to vector<16x4xf32>
    %130 = arith.truncf %129 : vector<16x4xf32> to vector<16x4xbf16>
    %131 = vector.extract_strided_slice %27 {offsets = [16, 0], sizes = [4, 32], strides = [1, 1]} : vector<32x32xbf16> to vector<4x32xbf16>
    %cst_36 = arith.constant dense<0.000000e+00> : vector<16x32xf32>
    %132 = tpu.matmul %130, %131, %cst_36 {dimension_numbers = #tpu.dot_dimension_numbers<[1], [0], [0], [1], [0, 0, 1, 1], [], []>} : vector<16x4xbf16>, vector<4x32xbf16>, vector<16x32xf32> -> vector<16x32xf32>
    %133 = arith.addf %112, %132 : vector<16x32xf32>
    %134 = vector.extract_strided_slice %20 {offsets = [0, 0, 20], sizes = [2, 8, 4], strides = [1, 1, 1]} : vector<2x8x32xbf16> to vector<2x8x4xbf16>
    %135 = vector.extract_strided_slice %23 {offsets = [0, 0, 20], sizes = [2, 8, 4], strides = [1, 1, 1]} : vector<2x8x32xbf16> to vector<2x8x4xbf16>
    %136 = vector.extract_strided_slice %26 {offsets = [0, 0, 20], sizes = [2, 8, 4], strides = [1, 1, 1]} : vector<2x8x32xbf16> to vector<2x8x4xbf16>
    "tpu.trace_start"() <{level = 10 : i32, message = "bqd,bkd->bqk"}> : () -> ()
    %cst_37 = arith.constant dense<0.000000e+00> : vector<2x8x8xf32>
    %137 = tpu.matmul %134, %135, %cst_37 {dimension_numbers = #tpu.dot_dimension_numbers<[2], [2], [1], [1], [0, 0, 0, 1, 1, 1], [0], [0]>} : vector<2x8x4xbf16>, vector<2x8x4xbf16>, vector<2x8x8xf32> -> vector<2x8x8xf32>
    "tpu.trace_stop"() : () -> ()
    %cst_38 = arith.constant dense<0xFF800000> : vector<2x8xf32>
    %138 = vector.multi_reduction <maximumf>, %137, %cst_38 [2] : vector<2x8x8xf32> to vector<2x8xf32>
    %139 = vector.shape_cast %138 : vector<2x8xf32> to vector<2x8x1xf32>
    %140 = vector.broadcast %139 : vector<2x8x1xf32> to vector<2x8x8xf32>
    %141 = arith.subf %137, %140 : vector<2x8x8xf32>
    %142 = math.exp %141 : vector<2x8x8xf32>
    %cst_39 = arith.constant dense<0.000000e+00> : vector<2x8xf32>
    %143 = vector.multi_reduction <add>, %142, %cst_39 [2] : vector<2x8x8xf32> to vector<2x8xf32>
    %144 = vector.shape_cast %143 : vector<2x8xf32> to vector<2x8x1xf32>
    %145 = tpu.reciprocal %144 {approx = true} : vector<2x8x1xf32> -> vector<2x8x1xf32>
    %146 = vector.broadcast %145 : vector<2x8x1xf32> to vector<2x8x8xf32>
    %147 = arith.mulf %142, %146 : vector<2x8x8xf32>
    %148 = arith.truncf %147 : vector<2x8x8xf32> to vector<2x8x8xbf16>
    "tpu.trace_start"() <{level = 10 : i32, message = "bqk,bkd->bqd"}> : () -> ()
    %cst_40 = arith.constant dense<0.000000e+00> : vector<2x8x4xf32>
    %149 = tpu.matmul %148, %136, %cst_40 {dimension_numbers = #tpu.dot_dimension_numbers<[2], [1], [1], [2], [0, 0, 0, 1, 1, 2], [0], [0]>} : vector<2x8x8xbf16>, vector<2x8x4xbf16>, vector<2x8x4xf32> -> vector<2x8x4xf32>
    "tpu.trace_stop"() : () -> ()
    %150 = vector.shape_cast %149 : vector<2x8x4xf32> to vector<16x4xf32>
    %151 = arith.truncf %150 : vector<16x4xf32> to vector<16x4xbf16>
    %152 = vector.extract_strided_slice %27 {offsets = [20, 0], sizes = [4, 32], strides = [1, 1]} : vector<32x32xbf16> to vector<4x32xbf16>
    %cst_41 = arith.constant dense<0.000000e+00> : vector<16x32xf32>
    %153 = tpu.matmul %151, %152, %cst_41 {dimension_numbers = #tpu.dot_dimension_numbers<[1], [0], [0], [1], [0, 0, 1, 1], [], []>} : vector<16x4xbf16>, vector<4x32xbf16>, vector<16x32xf32> -> vector<16x32xf32>
    %154 = arith.addf %133, %153 : vector<16x32xf32>
    %155 = vector.extract_strided_slice %20 {offsets = [0, 0, 24], sizes = [2, 8, 4], strides = [1, 1, 1]} : vector<2x8x32xbf16> to vector<2x8x4xbf16>
    %156 = vector.extract_strided_slice %23 {offsets = [0, 0, 24], sizes = [2, 8, 4], strides = [1, 1, 1]} : vector<2x8x32xbf16> to vector<2x8x4xbf16>
    %157 = vector.extract_strided_slice %26 {offsets = [0, 0, 24], sizes = [2, 8, 4], strides = [1, 1, 1]} : vector<2x8x32xbf16> to vector<2x8x4xbf16>
    "tpu.trace_start"() <{level = 10 : i32, message = "bqd,bkd->bqk"}> : () -> ()
    %cst_42 = arith.constant dense<0.000000e+00> : vector<2x8x8xf32>
    %158 = tpu.matmul %155, %156, %cst_42 {dimension_numbers = #tpu.dot_dimension_numbers<[2], [2], [1], [1], [0, 0, 0, 1, 1, 1], [0], [0]>} : vector<2x8x4xbf16>, vector<2x8x4xbf16>, vector<2x8x8xf32> -> vector<2x8x8xf32>
    "tpu.trace_stop"() : () -> ()
    %cst_43 = arith.constant dense<0xFF800000> : vector<2x8xf32>
    %159 = vector.multi_reduction <maximumf>, %158, %cst_43 [2] : vector<2x8x8xf32> to vector<2x8xf32>
    %160 = vector.shape_cast %159 : vector<2x8xf32> to vector<2x8x1xf32>
    %161 = vector.broadcast %160 : vector<2x8x1xf32> to vector<2x8x8xf32>
    %162 = arith.subf %158, %161 : vector<2x8x8xf32>
    %163 = math.exp %162 : vector<2x8x8xf32>
    %cst_44 = arith.constant dense<0.000000e+00> : vector<2x8xf32>
    %164 = vector.multi_reduction <add>, %163, %cst_44 [2] : vector<2x8x8xf32> to vector<2x8xf32>
    %165 = vector.shape_cast %164 : vector<2x8xf32> to vector<2x8x1xf32>
    %166 = tpu.reciprocal %165 {approx = true} : vector<2x8x1xf32> -> vector<2x8x1xf32>
    %167 = vector.broadcast %166 : vector<2x8x1xf32> to vector<2x8x8xf32>
    %168 = arith.mulf %163, %167 : vector<2x8x8xf32>
    %169 = arith.truncf %168 : vector<2x8x8xf32> to vector<2x8x8xbf16>
    "tpu.trace_start"() <{level = 10 : i32, message = "bqk,bkd->bqd"}> : () -> ()
    %cst_45 = arith.constant dense<0.000000e+00> : vector<2x8x4xf32>
    %170 = tpu.matmul %169, %157, %cst_45 {dimension_numbers = #tpu.dot_dimension_numbers<[2], [1], [1], [2], [0, 0, 0, 1, 1, 2], [0], [0]>} : vector<2x8x8xbf16>, vector<2x8x4xbf16>, vector<2x8x4xf32> -> vector<2x8x4xf32>
    "tpu.trace_stop"() : () -> ()
    %171 = vector.shape_cast %170 : vector<2x8x4xf32> to vector<16x4xf32>
    %172 = arith.truncf %171 : vector<16x4xf32> to vector<16x4xbf16>
    %173 = vector.extract_strided_slice %27 {offsets = [24, 0], sizes = [4, 32], strides = [1, 1]} : vector<32x32xbf16> to vector<4x32xbf16>
    %cst_46 = arith.constant dense<0.000000e+00> : vector<16x32xf32>
    %174 = tpu.matmul %172, %173, %cst_46 {dimension_numbers = #tpu.dot_dimension_numbers<[1], [0], [0], [1], [0, 0, 1, 1], [], []>} : vector<16x4xbf16>, vector<4x32xbf16>, vector<16x32xf32> -> vector<16x32xf32>
    %175 = arith.addf %154, %174 : vector<16x32xf32>
    %176 = vector.extract_strided_slice %20 {offsets = [0, 0, 28], sizes = [2, 8, 4], strides = [1, 1, 1]} : vector<2x8x32xbf16> to vector<2x8x4xbf16>
    %177 = vector.extract_strided_slice %23 {offsets = [0, 0, 28], sizes = [2, 8, 4], strides = [1, 1, 1]} : vector<2x8x32xbf16> to vector<2x8x4xbf16>
    %178 = vector.extract_strided_slice %26 {offsets = [0, 0, 28], sizes = [2, 8, 4], strides = [1, 1, 1]} : vector<2x8x32xbf16> to vector<2x8x4xbf16>
    "tpu.trace_start"() <{level = 10 : i32, message = "bqd,bkd->bqk"}> : () -> ()
    %cst_47 = arith.constant dense<0.000000e+00> : vector<2x8x8xf32>
    %179 = tpu.matmul %176, %177, %cst_47 {dimension_numbers = #tpu.dot_dimension_numbers<[2], [2], [1], [1], [0, 0, 0, 1, 1, 1], [0], [0]>} : vector<2x8x4xbf16>, vector<2x8x4xbf16>, vector<2x8x8xf32> -> vector<2x8x8xf32>
    "tpu.trace_stop"() : () -> ()
    %cst_48 = arith.constant dense<0xFF800000> : vector<2x8xf32>
    %180 = vector.multi_reduction <maximumf>, %179, %cst_48 [2] : vector<2x8x8xf32> to vector<2x8xf32>
    %181 = vector.shape_cast %180 : vector<2x8xf32> to vector<2x8x1xf32>
    %182 = vector.broadcast %181 : vector<2x8x1xf32> to vector<2x8x8xf32>
    %183 = arith.subf %179, %182 : vector<2x8x8xf32>
    %184 = math.exp %183 : vector<2x8x8xf32>
    %cst_49 = arith.constant dense<0.000000e+00> : vector<2x8xf32>
    %185 = vector.multi_reduction <add>, %184, %cst_49 [2] : vector<2x8x8xf32> to vector<2x8xf32>
    %186 = vector.shape_cast %185 : vector<2x8xf32> to vector<2x8x1xf32>
    %187 = tpu.reciprocal %186 {approx = true} : vector<2x8x1xf32> -> vector<2x8x1xf32>
    %188 = vector.broadcast %187 : vector<2x8x1xf32> to vector<2x8x8xf32>
    %189 = arith.mulf %184, %188 : vector<2x8x8xf32>
    %190 = arith.truncf %189 : vector<2x8x8xf32> to vector<2x8x8xbf16>
    "tpu.trace_start"() <{level = 10 : i32, message = "bqk,bkd->bqd"}> : () -> ()
    %cst_50 = arith.constant dense<0.000000e+00> : vector<2x8x4xf32>
    %191 = tpu.matmul %190, %178, %cst_50 {dimension_numbers = #tpu.dot_dimension_numbers<[2], [1], [1], [2], [0, 0, 0, 1, 1, 2], [0], [0]>} : vector<2x8x8xbf16>, vector<2x8x4xbf16>, vector<2x8x4xf32> -> vector<2x8x4xf32>
    "tpu.trace_stop"() : () -> ()
    %192 = vector.shape_cast %191 : vector<2x8x4xf32> to vector<16x4xf32>
    %193 = arith.truncf %192 : vector<16x4xf32> to vector<16x4xbf16>
    %194 = vector.extract_strided_slice %27 {offsets = [28, 0], sizes = [4, 32], strides = [1, 1]} : vector<32x32xbf16> to vector<4x32xbf16>
    %cst_51 = arith.constant dense<0.000000e+00> : vector<16x32xf32>
    %195 = tpu.matmul %193, %194, %cst_51 {dimension_numbers = #tpu.dot_dimension_numbers<[1], [0], [0], [1], [0, 0, 1, 1], [], []>} : vector<16x4xbf16>, vector<4x32xbf16>, vector<16x32xf32> -> vector<16x32xf32>
    %196 = arith.addf %175, %195 : vector<16x32xf32>
    %c0_52 = arith.constant 0 : index
    %c0_53 = arith.constant 0 : index
    %197 = vector.load %arg5[%c0_52, %c0_53] : memref<1x32xf32, #tpu.memory_space<vmem>>, vector<1x32xf32>
    %198 = vector.broadcast %197 : vector<1x32xf32> to vector<16x32xf32>
    %199 = arith.addf %196, %198 : vector<16x32xf32>
    %200 = arith.addf %1, %199 : vector<16x32xf32>
    %201 = arith.mulf %200, %200 : vector<16x32xf32>
    %cst_54 = arith.constant dense<0.000000e+00> : vector<16xf32>
    %202 = vector.multi_reduction <add>, %201, %cst_54 [1] : vector<16x32xf32> to vector<16xf32>
    %203 = vector.shape_cast %202 : vector<16xf32> to vector<16x1xf32>
    %cst_55 = arith.constant 3.200000e+01 : f32
    %204 = vector.broadcast %cst_55 : f32 to vector<16x1xf32>
    %205 = arith.divf %203, %204 : vector<16x1xf32>
    %cst_56 = arith.constant 9.99999997E-7 : f32
    %206 = vector.broadcast %cst_56 : f32 to vector<16x1xf32>
    %207 = arith.addf %205, %206 : vector<16x1xf32>
    %208 = math.rsqrt %207 : vector<16x1xf32>
    %209 = vector.broadcast %208 : vector<16x1xf32> to vector<16x32xf32>
    %210 = arith.mulf %200, %209 : vector<16x32xf32>
    %211 = arith.truncf %210 : vector<16x32xf32> to vector<16x32xbf16>
    %c0_57 = arith.constant 0 : index
    %c0_58 = arith.constant 0 : index
    %212 = vector.load %arg6[%c0_57, %c0_58] : memref<32x512xbf16, #tpu.memory_space<vmem>>, vector<32x512xbf16>
    %cst_59 = arith.constant dense<0.000000e+00> : vector<16x512xf32>
    %213 = tpu.matmul %211, %212, %cst_59 {dimension_numbers = #tpu.dot_dimension_numbers<[1], [0], [0], [1], [0, 0, 1, 1], [], []>} : vector<16x32xbf16>, vector<32x512xbf16>, vector<16x512xf32> -> vector<16x512xf32>
    %214 = vector.extract_strided_slice %213 {offsets = [0, 0], sizes = [16, 256], strides = [1, 1]} : vector<16x512xf32> to vector<16x256xf32>
    %215 = vector.extract_strided_slice %213 {offsets = [0, 256], sizes = [16, 256], strides = [1, 1]} : vector<16x512xf32> to vector<16x256xf32>
    %216 = arith.negf %214 : vector<16x256xf32>
    %217 = math.exp %216 : vector<16x256xf32>
    %cst_60 = arith.constant 1.000000e+00 : f32
    %218 = vector.broadcast %cst_60 : f32 to vector<16x256xf32>
    %219 = arith.addf %218, %217 : vector<16x256xf32>
    %220 = arith.divf %218, %219 : vector<16x256xf32>
    %221 = arith.mulf %214, %220 : vector<16x256xf32>
    %222 = arith.mulf %221, %215 : vector<16x256xf32>
    %223 = arith.truncf %222 : vector<16x256xf32> to vector<16x256xbf16>
    %c0_61 = arith.constant 0 : index
    %c0_62 = arith.constant 0 : index
    %224 = vector.load %arg7[%c0_61, %c0_62] : memref<256x32xbf16, #tpu.memory_space<vmem>>, vector<256x32xbf16>
    %cst_63 = arith.constant dense<0.000000e+00> : vector<16x32xf32>
    %225 = tpu.matmul %223, %224, %cst_63 {dimension_numbers = #tpu.dot_dimension_numbers<[1], [0], [0], [1], [0, 0, 1, 1], [], []>} : vector<16x256xbf16>, vector<256x32xbf16>, vector<16x32xf32> -> vector<16x32xf32>
    %226 = arith.addf %200, %225 : vector<16x32xf32>
    %227 = vector.shape_cast %226 : vector<16x32xf32> to vector<2x8x32xf32>
    %c0_64 = arith.constant 0 : index
    %c0_65 = arith.constant 0 : index
    %c0_66 = arith.constant 0 : index
    %228 = vector.load %arg8[%c0_64, %c0_65, %c0_66] : memref<2x8x32xf32, #tpu.memory_space<vmem>>, vector<2x8x32xf32>
    tpu.vector_store %arg8[%c0_64, %c0_65, %c0_66], %227 {strides = array<i32>} : memref<2x8x32xf32, #tpu.memory_space<vmem>>, vector<2x8x32xf32>,
    return
  }
  func.func @transform_0(%arg0: i32) -> (i32, i32, i32) {
    %c0_i32 = arith.constant 0 : i32
    %c0_i32_0 = arith.constant 0 : i32
    %c0_i32_1 = arith.constant 0 : i32
    return %arg0, %c0_i32, %c0_i32_0 : i32, i32, i32
  }
  func.func @transform_1(%arg0: i32) -> (i32, i32) {
    %c0_i32 = arith.constant 0 : i32
    %c0_i32_0 = arith.constant 0 : i32
    %c0_i32_1 = arith.constant 0 : i32
    return %c0_i32, %c0_i32_0 : i32, i32
  }
  func.func @transform_2(%arg0: i32) -> (i32, i32) {
    %c0_i32 = arith.constant 0 : i32
    %c0_i32_0 = arith.constant 0 : i32
    %c0_i32_1 = arith.constant 0 : i32
    return %c0_i32, %c0_i32_0 : i32, i32
  }
  func.func @transform_3(%arg0: i32) -> (i32, i32) {
    %c0_i32 = arith.constant 0 : i32
    %c0_i32_0 = arith.constant 0 : i32
    %c0_i32_1 = arith.constant 0 : i32
    return %c0_i32, %c0_i32_0 : i32, i32
  }
  func.func @transform_4(%arg0: i32) -> (i32, i32) {
    %c0_i32 = arith.constant 0 : i32
    %c0_i32_0 = arith.constant 0 : i32
    %c0_i32_1 = arith.constant 0 : i32
    return %c0_i32, %c0_i32_0 : i32, i32
  }
  func.func @transform_5(%arg0: i32) -> (i32, i32) {
    %c0_i32 = arith.constant 0 : i32
    %c0_i32_0 = arith.constant 0 : i32
    %c0_i32_1 = arith.constant 0 : i32
    return %c0_i32, %c0_i32_0 : i32, i32
  }
  func.func @transform_6(%arg0: i32) -> (i32, i32) {
    %c0_i32 = arith.constant 0 : i32
    %c0_i32_0 = arith.constant 0 : i32
    %c0_i32_1 = arith.constant 0 : i32
    return %c0_i32, %c0_i32_0 : i32, i32
  }
  func.func @transform_7(%arg0: i32) -> (i32, i32, i32) {
    %c0_i32 = arith.constant 0 : i32
    %c0_i32_0 = arith.constant 0 : i32
    %c0_i32_1 = arith.constant 0 : i32
    return %arg0, %c0_i32, %c0_i32_0 : i32, i32, i32
  }
}

</mosaic_0001>

<bundles_post_ra>
// kernel: tpu_custom_call.1
= control target key start
LH: loop header
LB: loop body
LE: loop exit
PB: predicated region body
PF: predicated region fallthrough
CT: control target
= control target key end

     0   :  { %12 = vsyncpa [#allocation3], 0  ;;  %s4337_s0 = inlined_call_operand.vmem [shape: f32[4,8,32], index: 0, kind: input, shape index: {}]   ;;  %s4338_s1 = inlined_call_operand.vmem [shape: bf16[32,96], index: 1, kind: input, shape index: {}]   ;;  %s4339_s2 = inlined_call_operand.vmem [shape: f32[1,96], index: 2, kind: input, shape index: {}]   ;;  %s4340_s3 = inlined_call_operand.vmem [shape: bf16[32,32], index: 3, kind: input, shape index: {}]   ;;  %s4341_s4 = inlined_call_operand.vmem [shape: f32[1,32], index: 4, kind: input, shape index: {}]   ;;  %s4342_s5 = inlined_call_operand.vmem [shape: bf16[32,512], index: 5, kind: input, shape index: {}]   ;;  %s4343_s6 = inlined_call_operand.vmem [shape: bf16[256,32], index: 6, kind: input, shape index: {}]   ;;  %s4344_s7 = inlined_call_operand.hbm [shape: f32[4,8,32], index: 7, kind: output, shape index: {}]  }
   0x1   :  { %14 = vsyncpa [#allocation3 + $0x1], 0  ;;  %s3766_s24 = smov 0   ;;  %s3768_s25 = smov 0  }
   0x2   :  { %s3770_s26 = smov 0   ;;  %s3772_s27 = smov 0  }
   0x3 LB: > { %s3787_s28 = sadd.s32 4294967295, %s3695_s27   ;;  %s2997_s29 = sadd.s32 4294967294, %s3695_s27   ;;  %s3695_s27 = sphi %s3772_s27, %s4350_s27   ;;  %s3691_s26 = sphi %s3770_s26, %s4349_s26   ;;  %s3687_s25 = sphi %s3768_s25, %s4348_s25   ;;  %s3683_s24 = sphi %s3766_s24, %s4347_s24  }
   0x4   : > { %s3791_s30 = sadd.s32 1, %s3695_s27   ;;  %s179_s8 = sadd.s32 1, %s3691_s26 }
   0x5   : > { %s176_s9 = ssub.s32 %s3695_s27, %s3791_s30  ;;  %p189_p0 = scmp.ne.s32.totalorder %s3691_s26, %s3687_s25 }
   0x6   : > { %p177_p1 = scmp.eq.s32.totalorder %s176_s9, 0  ;;  %p190_p2 = scmp.eq.s32.totalorder %s3787_s28, 1 }
   0x7   : > { %p195_p3 = scmp.ne.s32.totalorder %s3687_s25, %s3683_s24  ;;  %p196_p4 = scmp.eq.s32.totalorder %s2997_s29, 1 }
   0x8   : > { %s3802_s10 = scalar_select %p177_p1, %s3691_s26, %s179_s8  }
   0x9   : > { %p3804_p5 = por %p190_p2, %p189_p0  ;;  %p3808_p6 = por %p196_p4, %p195_p3 }
   0xa   : > { %p3000_p7 = scmp.ge.s32.totalorder %s3695_s27, 1  ;;  %p241_p8 = scmp.lt.s32.totalorder %s3695_s27, 3 }
   0xc   : > { %p242_p9 = pnand %p3000_p7, %p241_p8 }
   0xd   : > { %s3002_s13 = sshll.u32 (!%p242_p9), %s3787_s28, 1  ;;  %vm285_vm0 = vcmask (!%p242_p9), 261120   ;;  %v3509_v6 = vld [vmem:[%s4338_s1] sm:$0xff] (!%p242_p9)   ;;  %v3697_v7 = vmov (!%p242_p9), 0.0   ;;  %vm3698_vm1 = vmmov (!%p242_p9), 0   ;;  %v3510_v8 = vld [vmem:[%s4338_s1 + $0x8] sm:$0xff] (!%p242_p9)  }
   0xe   : > { %245 = sbr.rel (%p242_p9) target bundleno = 7184 (0x1c10), region = 48  ;;  %p274_p10 = scmp.lt.s32.totalorder (!%p242_p9), %s3002_s13, 3  ;;  %3194 = vmatprep.subr.bf16.mxu0 (!%p242_p9), %v3697_v7  ;;  %3198 = vmatprep.mubr.msk.bf16.mxu0 (!%p242_p9), %vm3698_vm1, %v3697_v7  ;;  %v3004_v20 = vld [vmem:[%s4339_s2] ss:$0 sm:$0xff] (!%p242_p9)  ;;  %vm378_vm2 = vcmask (!%p242_p9), 31744   ;;  %vm474_vm3 = vcmask (!%p242_p9), 64512  }
   0xf   : > { %3195 = vmatpush3.bf16.msra.mxu0 (!%p242_p9), %v3509_v6  ;;  %3214 = vmatprep.subr.bf16.mxu1 (!%p242_p9), %v3697_v7  ;;  %s3699_s29 = smov (!%p242_p9), 96   ;;  %s3700_s8 = smov (!%p242_p9), 64   ;;  %vm504_vm4 = vcmask (!%p242_p9), 1043456   ;;  %vm825_vm5 = vcmask (!%p242_p9), 1041408  }
  0x10   : > { %3196 = vmatprep.subr.bf16.mxu0 (!%p242_p9), %v3697_v7  ;;  %3216 = vmatprep.mubr.msk.bf16.mxu1 (!%p242_p9), %vm3698_vm1, %v3697_v7  ;;  %s3701_s9 = smov (!%p242_p9), 92   ;;  %s3704_s15 = smov (!%p242_p9), 88  }
  0x11   : > { %s3705_s16 = smov (!%p242_p9), 120   ;;  %s3706_s20 = smov (!%p242_p9), 56  }
  0x12   : > { %s3707_s21 = smov (!%p242_p9), 84   ;;  %s3708_s22 = smov (!%p242_p9), 116  }
  0x13   : > { %3197 = vmatpush3.bf16.msra.mxu0 (!%p242_p9), %v3510_v8  ;;  %s3718_s23 = smov (!%p242_p9), 40   ;;  %s3723_s19 = smov (!%p242_p9), [#allocation2]  }
  0x14   : > { %3202 = vmatprep.subr.bf16.mxu0 (!%p242_p9), %v3697_v7 }
  0x15   : > { %s4352_s13 = smov (!%p274_p10, %s3002_s13), 3 }
  0x16   : > { %s3003_s14 = sshll.u32 %s4352_s13, 3  ;;  %s3702_s13 = smov 124  }
  0x17   : > { %s3818_s17 = scalar_lea.vmem %s4337_s0, %s3003_s14  ;;  %s3703_s14 = smov 60  }
  0x18   : > { %v281_v0 = vld [vmem:[%s3818_s17] sm:$0xff]  ;;  %v282_v1 = vld [vmem:[%s3818_s17 + $0x8] sm:$0xff] }
  0x19   : > { %v283_v2 = vmul.f32 %v281_v0, %v281_v0  ;;  %v284_v3 = vmul.f32 %v282_v1, %v282_v1 }
  0x1b   : > { %v286_v4 = vsel %vm285_vm0, %v283_v2, 0.0  ;;  %v289_v5 = vsel %vm285_vm0, %v284_v3, 0.0 }
  0x1c   : > { %287 = vadd.xlane.f32.xlu0 %v286_v4 }
  0x20   : > { %290 = vadd.xlane.f32.xlu0 %v289_v5 }
  0xa9   : > { %v288_v9 = vpop.xlane.xlu0 %287 }
  0xaa   : > { %v293_v10 = vmul.f32 0.03125, %v288_v9 }
  0xac   : > { %v295_v11 = vadd.f32 1e-06, %v293_v10 }
  0xad   : > { %v291_v12 = vpop.xlane.xlu0 %290 }
  0xae   : > { %v294_v13 = vmul.f32 0.03125, %v291_v12  ;;  %3543 = vrsqrt.f32 %v295_v11 }
  0xb0   : > { %v296_v14 = vadd.f32 1e-06, %v294_v13 }
  0xb2   : > { %3545 = vrsqrt.f32 %v296_v14 }
  0xb8   : > { %v3544_v15 = vpop.eup %3543 }
  0xb9   : > { %v299_v17 = vmul.f32 %v3544_v15, %v281_v0 }
  0xbc   : > { %v3546_v16 = vpop.eup %3545 }
  0xbd   : > { %v300_v18 = vmul.f32 %v3546_v16, %v282_v1 }
  0xbf   : > { %v301_v19 = vpack.c.bf16 %v300_v18, %v299_v17 }
  0xc1   : > { %3199 = vmatmul.mubr.msk.bf16.vlgmr.msra.gmra.mrb[0].mxu0 %vm285_vm0, %v301_v19 }
  0xc2   : > { %3204 = vmatprep.mubr.msk.bf16.mxu0 %vm3698_vm1, %v3697_v7 }
 0x194   : > { %v362_v21 = vpop.f32.mrb[0].mxu0 }
 0x195   : > { %v363_v22 = vadd.f32 %v3004_v20, %v362_v21  ;;  %v3200_v23 = vpop.f32.mrb[1].mxu0 }
 0x196   : > { %v365_v24 = vpop.f32.mrb[2].mxu0 }
 0x197   : > { %v3844_v25 = vpack.c.bf16 %v363_v22, %v363_v22  ;;  %v366_v26 = vadd.f32 %v3004_v20, %v365_v24  ;;  %v3201_v27 = vpop.f32.mrb[3].mxu0 }
 0x199   : > { %376 = vrot.lane.b32.xlu1 %v3844_v25, %s3699_s29  ;;  %v3847_v28 = vpack.c.bf16 %v366_v26, %v366_v26 }
 0x19d   : > { %426 = vrot.lane.b32.xlu1 %v3847_v28, %s3699_s29  ;;  %s3719_s29 = smov 68  }
 0x20b   : > { %v377_v29 = vpop.permute.xlu1 %376 }
 0x20c   : > { %v383_v30 = vsel %vm378_vm2, %v377_v29, 0 }
 0x20d   : > { %3203 = vmatpush3.bf16.xpose.msra.mxu0 %v383_v30 }
 0x20e   : > { %3208 = vmatprep.subr.bf16.mxu0 %v3697_v7 }
 0x20f   : > { %v427_v31 = vpop.permute.xlu1 %426 }
 0x210   : > { %v432_v32 = vsel %vm378_vm2, %v427_v31, 0 }
 0x214   : > { %3205 = vmatmul.mubr.msk.bf16.vlgmr.msra.gmra.mrb[4].mxu0 %vm378_vm2, %v3844_v25 }
 0x215   : > { %3209 = vmatpush3.bf16.xpose.msra.mxu0 %v432_v32  ;;  %3210 = vmatprep.mubr.msk.bf16.mxu0 %vm3698_vm1, %v3697_v7 }
 0x216   : > { %3220 = vmatprep.subr.bf16.mxu0 %v3697_v7 }
 0x21c   : > { %3211 = vmatmul.mubr.msk.bf16.vlgmr.msra.gmra.mrb[8].mxu0 %vm378_vm2, %v3847_v28 }
 0x21d   : > { %3222 = vmatprep.mubr.msk.bf16.mxu0 %vm3698_vm1, %v3697_v7 }
 0x2e7   : > { %v419_v33 = vpop.f32.mrb[4].mxu0 }
 0x2e8   : > { %v3206_v34 = vpop.f32.mrb[5].mxu0  ;;  %v475_v35 = vsel %vm474_vm3, %v419_v33, -inf }
 0x2e9   : > { %476 = vmax.xlane.f32.xlu0 %v475_v35  ;;  %v422_v36 = vpop.f32.mrb[6].mxu0 }
 0x2ea   : > { %v3207_v37 = vpop.f32.mrb[7].mxu0 }
 0x2ef   : > { %v468_v38 = vpop.f32.mrb[8].mxu0 }
 0x2f0   : > { %v3212_v39 = vpop.f32.mrb[9].mxu0  ;;  %v478_v40 = vsel %vm474_vm3, %v468_v38, -inf }
 0x2f1   : > { %479 = vmax.xlane.f32.xlu1 %v478_v40  ;;  %v471_v41 = vpop.f32.mrb[10].mxu0 }
 0x2f2   : > { %v3213_v42 = vpop.f32.mrb[11].mxu0 }
 0x2ff   : > { %499 = vrot.lane.b32.xlu0 %v3844_v25, %s3700_s8 }
 0x302   : > { %599 = vrot.lane.b32.xlu1 %v3844_v25, %s3701_s9 }
 0x303   : > { %548 = vrot.lane.b32.xlu0 %v3847_v28, %s3700_s8  ;;  %s3709_s8 = smov 52  }
 0x376   : > { %v477_v43 = vpop.xlane.xlu0 %476 }
 0x377   : > { %v481_v44 = vsub.f32 %v419_v33, %v477_v43 }
 0x379   : > { %v483_v45 = vmul.f32 1.442695, %v481_v44 }
 0x37a   : > { %v500_v46 = vpop.permute.xlu0 %499 }
 0x37b   : > { %3547 = vpow2.f32 %v483_v45  ;;  %v506_v47 = vsel %vm504_vm4, %v500_v46, 0 }
 0x37c   : > { %3215 = vmatpush3.bf16.msra.mxu1 %v506_v47 }
 0x37d   : > { %3226 = vmatprep.subr.bf16.mxu1 %v3697_v7 }
 0x37e   : > { %v549_v48 = vpop.permute.xlu0 %548  ;;  %v480_v49 = vpop.xlane.xlu1 %479 }
 0x37f   : > { %v554_v50 = vsel %vm504_vm4, %v549_v48, 0  ;;  %v482_v51 = vsub.f32 %v468_v38, %v480_v49  ;;  %v371_v49 = vld [vmem:[%s4340_s3] sm:$0xf] }
 0x380   : > { %3221 = vmatpush3.bf16.msra.mxu0 %v554_v50 }
 0x381   : > { %v485_v52 = vmul.f32 1.442695, %v482_v51  ;;  %3232 = vmatprep.subr.bf16.mxu0 %v3697_v7 }
 0x382   : > { %v600_v61 = vpop.permute.xlu1 %599 }
 0x383   : > { %3549 = vpow2.f32 %v485_v52  ;;  %v605_v63 = vsel %vm378_vm2, %v600_v61, 0  ;;  %v874_v52 = vsel %vm825_vm5, %v371_v49, 0 }
 0x385   : > { %v3548_v53 = vpop.eup %3547 }
 0x386   : > { %v487_v54 = vsel %vm474_vm3, %v3548_v53, 0.0 }
 0x387   : > { %488 = vadd.xlane.f32.xlu0 %v487_v54 }
 0x38d   : > { %v3550_v55 = vpop.eup %3549 }
 0x38e   : > { %v490_v56 = vsel %vm474_vm3, %v3550_v55, 0.0 }
 0x38f   : > { %491 = vadd.xlane.f32.xlu0 %v490_v56 }
 0x3a5   : > { %649 = vrot.lane.b32.xlu0 %v3847_v28, %s3701_s9  ;;  %s3710_s9 = smov 80  }
 0x3a9   : > { %597 = vrot.lane.b32.xlu0 %v3844_v25, %s3702_s13 }
 0x3ad   : > { %647 = vrot.lane.b32.xlu0 %v3847_v28, %s3702_s13  ;;  %s3711_s13 = smov 112  }
 0x414   : > { %v489_v57 = vpop.xlane.xlu0 %488 }
 0x415   : > { %3551 = vrcp.f32 %v489_v57  ;;  %v3016_v57 = vcombine.low %v371_v49, %v371_v49 }
 0x41c   : > { %v492_v58 = vpop.xlane.xlu0 %491 }
 0x41d   : > { %3553 = vrcp.f32 %v492_v58  ;;  %v821_v58 = vrot.slane %v3016_v57, 2 }
 0x41f   : > { %v3552_v59 = vpop.eup %3551 }
 0x420   : > { %v495_v60 = vmul.f32 %v3552_v59, %v3548_v53  ;;  %v650_v0 = vpop.permute.xlu0 %649  ;;  %v827_v59 = vsel %vm825_vm5, %v821_v58, 0 }
 0x421   : > { %v655_v5 = vsel %vm378_vm2, %v650_v0, 0 }
 0x422   : > { %v497_v62 = vpack.c.bf16 %v495_v60, %v495_v60 }
 0x424   : > { %3217 = vmatmul.mubr.msk.bf16.vlgmr.msra.gmra.mrb[0].mxu1 %vm474_vm3, %v497_v62  ;;  %v598_v4 = vpop.permute.xlu0 %597 }
 0x425   : > { %3227 = vmatpush3.bf16.xpose.msra.mxu1 %v605_v63  ;;  %3228 = vmatprep.mubr.msk.bf16.mxu1 %vm3698_vm1, %v3697_v7 }
 0x426   : > { %3238 = vmatprep.subr.bf16.mxu1 %v3697_v7 }
 0x427   : > { %v3554_v1 = vpop.eup %3553 }
 0x428   : > { %v496_v2 = vmul.f32 %v3554_v1, %v3550_v55  ;;  %v648_v6 = vpop.permute.xlu0 %647 }
 0x42a   : > { %v498_v3 = vpack.c.bf16 %v496_v2, %v496_v2 }
 0x42c   : > { %3223 = vmatmul.mubr.msk.bf16.vlgmr.msra.gmra.mrb[12].mxu0 %vm474_vm3, %v498_v3  ;;  %3229 = vmatmul.mubr.msk.bf16.vlgmr.msra.gmra.mrb[4].mxu1 %vm378_vm2, %v598_v4 }
 0x42d   : > { %3233 = vmatpush3.bf16.xpose.msra.mxu0 %v655_v5  ;;  %3234 = vmatprep.mubr.msk.bf16.mxu0 %vm3698_vm1, %v3697_v7 }
 0x42e   : > { %3244 = vmatprep.subr.bf16.mxu0 %v3697_v7  ;;  %3240 = vmatprep.mubr.msk.bf16.mxu1 %vm3698_vm1, %v3697_v7 }
 0x434   : > { %3235 = vmatmul.mubr.msk.bf16.vlgmr.msra.gmra.mrb[16].mxu0 %vm378_vm2, %v648_v6 }
 0x435   : > { %3246 = vmatprep.mubr.msk.bf16.mxu0 %vm3698_vm1, %v3697_v7 }
 0x4f7   : > { %v3892_v8 = vpop.f32.mrb[0].mxu1 }
 0x4f8   : > { %v3218_v9 = vpop.f32.mrb[1].mxu1 }
 0x4f9   : > { %v545_v10 = vpop.f32.mrb[2].mxu1 }
 0x4fa   : > { %v3219_v11 = vpop.f32.mrb[3].mxu1 }
 0x4ff   : > { %v3894_v12 = vpop.f32.mrb[12].mxu0  ;;  %v641_v13 = vpop.f32.mrb[4].mxu1 }
 0x500   : > { %v596_v14 = vpack.c.bf16 %v3894_v12, %v3892_v8  ;;  %v3224_v15 = vpop.f32.mrb[13].mxu0  ;;  %v3230_v16 = vpop.f32.mrb[5].mxu1  ;;  %v697_v17 = vsel %vm474_vm3, %v641_v13, -inf }
 0x501   : > { %698 = vmax.xlane.f32.xlu0 %v697_v17  ;;  %v593_v18 = vpop.f32.mrb[14].mxu0  ;;  %v644_v19 = vpop.f32.mrb[6].mxu1 }
 0x502   : > { %v3225_v20 = vpop.f32.mrb[15].mxu0  ;;  %v3231_v21 = vpop.f32.mrb[7].mxu1 }
 0x507   : > { %v691_v22 = vpop.f32.mrb[16].mxu0 }
 0x508   : > { %v3236_v23 = vpop.f32.mrb[17].mxu0  ;;  %v700_v24 = vsel %vm474_vm3, %v691_v22, -inf }
 0x509   : > { %701 = vmax.xlane.f32.xlu1 %v700_v24  ;;  %v694_v26 = vpop.f32.mrb[18].mxu0 }
 0x50a   : > { %v3237_v27 = vpop.f32.mrb[19].mxu0 }
 0x51a   : > { %769 = vrot.lane.b32.xlu1 %v3847_v28, %s3703_s14 }
 0x51e   : > { %919 = vrot.lane.b32.xlu1 %v3844_v25, %s3704_s15 }
 0x522   : > { %969 = vrot.lane.b32.xlu1 %v3847_v28, %s3704_s15  ;;  %s3713_s15 = smov 76  }
 0x526   : > { %967 = vrot.lane.b32.xlu1 %v3847_v28, %s3705_s16 }
 0x58e   : > { %v699_v29 = vpop.xlane.xlu0 %698 }
 0x58f   : > { %v703_v30 = vsub.f32 %v641_v13, %v699_v29 }
 0x591   : > { %v705_v31 = vmul.f32 1.442695, %v703_v30 }
 0x593   : > { %3555 = vpow2.f32 %v705_v31 }
 0x596   : > { %v702_v32 = vpop.xlane.xlu1 %701 }
 0x597   : > { %v704_v33 = vsub.f32 %v691_v22, %v702_v32 }
 0x599   : > { %v707_v34 = vmul.f32 1.442695, %v704_v33 }
 0x59a   : > { %v770_v35 = vpop.permute.xlu1 %769 }
 0x59b   : > { %3557 = vpow2.f32 %v707_v34  ;;  %v775_v36 = vsel %vm504_vm4, %v770_v35, 0 }
 0x59c   : > { %3245 = vmatpush3.bf16.msra.mxu0 %v775_v36 }
 0x59d   : > { %v3556_v37 = vpop.eup %3555  ;;  %3256 = vmatprep.subr.bf16.mxu0 %v3697_v7 }
 0x59e   : > { %v709_v38 = vsel %vm474_vm3, %v3556_v37, 0.0  ;;  %v920_v53 = vpop.permute.xlu1 %919 }
 0x59f   : > { %710 = vadd.xlane.f32.xlu0 %v709_v38  ;;  %v925_v4 = vsel %vm378_vm2, %v920_v53, 0 }
 0x5a2   : > { %v970_v54 = vpop.permute.xlu1 %969 }
 0x5a3   : > { %v975_v55 = vsel %vm378_vm2, %v970_v54, 0 }
 0x5a5   : > { %v3558_v39 = vpop.eup %3557 }
 0x5a6   : > { %v712_v40 = vsel %vm474_vm3, %v3558_v39, 0.0  ;;  %v968_v56 = vpop.permute.xlu1 %967 }
 0x5a7   : > { %713 = vadd.xlane.f32.xlu0 %v712_v40 }
 0x5bd   : > { %721 = vrot.lane.b32.xlu0 %v3844_v25, %s3703_s14  ;;  %s3712_s14 = smov 48  }
 0x5c1   : > { %917 = vrot.lane.b32.xlu0 %v3844_v25, %s3705_s16  ;;  %s3714_s16 = smov 108  }
 0x62c   : > { %v711_v41 = vpop.xlane.xlu0 %710 }
 0x62d   : > { %3559 = vrcp.f32 %v711_v41 }
 0x634   : > { %v714_v42 = vpop.xlane.xlu0 %713 }
 0x635   : > { %3561 = vrcp.f32 %v714_v42 }
 0x637   : > { %v3560_v43 = vpop.eup %3559 }
 0x638   : > { %v717_v44 = vmul.f32 %v3560_v43, %v3556_v37  ;;  %v722_v45 = vpop.permute.xlu0 %721 }
 0x639   : > { %v727_v46 = vsel %vm504_vm4, %v722_v45, 0 }
 0x63a   : > { %3239 = vmatpush3.bf16.msra.mxu1 %v727_v46  ;;  %v719_v47 = vpack.c.bf16 %v717_v44, %v717_v44 }
 0x63b   : > { %3250 = vmatprep.subr.bf16.mxu1 %v3697_v7 }
 0x63c   : > { %v918_v9 = vpop.permute.xlu0 %917 }
 0x63d   : > { %3241 = vmatmul.mubr.msk.bf16.vlgmr.msra.gmra.mrb[8].mxu1 %vm474_vm3, %v719_v47 }
 0x63e   : > { %3252 = vmatprep.mubr.msk.bf16.mxu1 %vm3698_vm1, %v3697_v7  ;;  %3251 = vmatpush3.bf16.msra.mxu1 %v827_v59  ;;  %v3980_v59 = vld [vmem:[%s4340_s3 + $0x4] sm:$0xf] }
 0x63f   : > { %v3562_v48 = vpop.eup %3561  ;;  %3262 = vmatprep.subr.bf16.mxu1 %v3697_v7 }
 0x640   : > { %v718_v50 = vmul.f32 %v3562_v48, %v3558_v39 }
 0x642   : > { %v720_v51 = vpack.c.bf16 %v718_v50, %v718_v50 }
 0x644   : > { %3247 = vmatmul.mubr.msk.bf16.vlgmr.msra.gmra.mrb[20].mxu0 %vm474_vm3, %v720_v51 }
 0x645   : > { %3257 = vmatpush3.bf16.msra.mxu0 %v874_v52  ;;  %3258 = vmatprep.mubr.msk.bf16.mxu0 %vm3698_vm1, %v3697_v7 }
 0x646   : > { %3268 = vmatprep.subr.bf16.mxu0 %v3697_v7 }
 0x64c   : > { %3259 = vmatmul.mubr.msk.bf16.vlgmr.msra.gmra.mrb[24].mxu0 %vm378_vm2, %v596_v14 }
 0x64d   : > { %3270 = vmatprep.mubr.msk.bf16.mxu0 %vm3698_vm1, %v3697_v7 }
 0x64e   : > { %3269 = vmatpush3.bf16.xpose.msra.mxu0 %v975_v55 }
 0x64f   : > { %3280 = vmatprep.subr.bf16.mxu0 %v3697_v7 }
 0x655   : > { %3271 = vmatmul.mubr.msk.bf16.vlgmr.msra.gmra.mrb[28].mxu0 %vm378_vm2, %v968_v56 }
 0x656   : > { %3282 = vmatprep.mubr.msk.bf16.mxu0 %vm3698_vm1, %v3697_v7 }
 0x710   : > { %v763_v60 = vpop.f32.mrb[8].mxu1 }
 0x711   : > { %v3242_v61 = vpop.f32.mrb[9].mxu1 }
 0x712   : > { %v766_v62 = vpop.f32.mrb[10].mxu1 }
 0x713   : > { %v3243_v63 = vpop.f32.mrb[11].mxu1 }
 0x717   : > { %v811_v0 = vpop.f32.mrb[20].mxu0 }
 0x718   : > { %v817_v1 = vpack.c.bf16 %v811_v0, %v763_v60  ;;  %v3248_v2 = vpop.f32.mrb[21].mxu0  ;;  %v1142_v60 = vsel %vm825_vm5, %v3980_v59, 0 }
 0x719   : > { %v814_v3 = vpop.f32.mrb[22].mxu0 }
 0x71a   : > { %v3249_v5 = vpop.f32.mrb[23].mxu0  ;;  %3253 = vmatmul.mubr.msk.bf16.vlgmr.msra.gmra.mrb[12].mxu1 %vm378_vm2, %v817_v1 }
 0x71b   : > { %3263 = vmatpush3.bf16.xpose.msra.mxu1 %v925_v4  ;;  %3264 = vmatprep.mubr.msk.bf16.mxu1 %vm3698_vm1, %v3697_v7 }
 0x71c   : > { %3274 = vmatprep.subr.bf16.mxu1 %v3697_v7 }
 0x71f   : > { %v910_v6 = vpop.f32.mrb[24].mxu0 }
 0x720   : > { %v3260_v8 = vpop.f32.mrb[25].mxu0 }
 0x721   : > { %v913_v10 = vpop.f32.mrb[26].mxu0 }
 0x722   : > { %v3261_v11 = vpop.f32.mrb[27].mxu0  ;;  %3265 = vmatmul.mubr.msk.bf16.vlgmr.msra.gmra.mrb[16].mxu1 %vm378_vm2, %v918_v9 }
 0x723   : > { %3276 = vmatprep.mubr.msk.bf16.mxu1 %vm3698_vm1, %v3697_v7 }
 0x728   : > { %v1011_v12 = vpop.f32.mrb[28].mxu0 }
 0x729   : > { %v3272_v13 = vpop.f32.mrb[29].mxu0  ;;  %v1020_v14 = vsel %vm474_vm3, %v1011_v12, -inf }
 0x72a   : > { %1021 = vmax.xlane.f32.xlu1 %v1020_v14  ;;  %v1014_v15 = vpop.f32.mrb[30].mxu0 }
 0x72b   : > { %v3273_v16 = vpop.f32.mrb[31].mxu0 }
 0x73b   : > { %1089 = vrot.lane.b32.xlu1 %v3847_v28, %s3706_s20 }
 0x73f   : > { %1189 = vrot.lane.b32.xlu1 %v3844_v25, %s3707_s21 }
 0x743   : > { %1239 = vrot.lane.b32.xlu1 %v3847_v28, %s3707_s21  ;;  %s3716_s21 = smov 72  }
 0x747   : > { %1237 = vrot.lane.b32.xlu1 %v3847_v28, %s3708_s22 }
 0x7b7   : > { %v1022_v17 = vpop.xlane.xlu1 %1021 }
 0x7b8   : > { %v1024_v20 = vsub.f32 %v1011_v12, %v1022_v17 }
 0x7ba   : > { %v1027_v21 = vmul.f32 1.442695, %v1024_v20 }
 0x7bb   : > { %v1090_v18 = vpop.permute.xlu1 %1089 }
 0x7bc   : > { %v1095_v19 = vsel %vm504_vm4, %v1090_v18, 0  ;;  %3563 = vpow2.f32 %v1027_v21 }
 0x7bd   : > { %3281 = vmatpush3.bf16.msra.mxu0 %v1095_v19 }
 0x7be   : > { %3292 = vmatprep.subr.bf16.mxu0 %v3697_v7 }
 0x7bf   : > { %v1190_v45 = vpop.permute.xlu1 %1189 }
 0x7c0   : > { %v1195_v47 = vsel %vm378_vm2, %v1190_v45, 0 }
 0x7c3   : > { %v1240_v2 = vpop.permute.xlu1 %1239 }
 0x7c4   : > { %v1245_v8 = vsel %vm378_vm2, %v1240_v2, 0 }
 0x7c6   : > { %v3564_v33 = vpop.eup %3563 }
 0x7c7   : > { %v1032_v36 = vsel %vm474_vm3, %v3564_v33, 0.0 }
 0x7ed   : > { %v863_v22 = vpop.f32.mrb[12].mxu1 }
 0x7ee   : > { %v3953_v23 = vadd.f32 %v910_v6, %v863_v22  ;;  %v3254_v24 = vpop.f32.mrb[13].mxu1 }
 0x7ef   : > { %v866_v26 = vpop.f32.mrb[14].mxu1 }
 0x7f0   : > { %v3955_v27 = vadd.f32 %v913_v10, %v866_v26  ;;  %v3255_v29 = vpop.f32.mrb[15].mxu1  ;;  %v1238_v10 = vpop.permute.xlu1 %1237 }
 0x7f5   : > { %v961_v30 = vpop.f32.mrb[16].mxu1 }
 0x7f6   : > { %v3266_v31 = vpop.f32.mrb[17].mxu1  ;;  %v1017_v32 = vsel %vm474_vm3, %v961_v30, -inf }
 0x7f7   : > { %1018 = vmax.xlane.f32.xlu0 %v1017_v32  ;;  %v964_v34 = vpop.f32.mrb[18].mxu1 }
 0x7f8   : > { %v3267_v35 = vpop.f32.mrb[19].mxu1 }
 0x7fb   : > { %1033 = vadd.xlane.f32.xlu0 %v1032_v36 }
 0x884   : > { %v1019_v37 = vpop.xlane.xlu0 %1018 }
 0x885   : > { %v1023_v38 = vsub.f32 %v961_v30, %v1019_v37 }
 0x887   : > { %v1025_v39 = vmul.f32 1.442695, %v1023_v38 }
 0x888   : > { %v1034_v40 = vpop.xlane.xlu0 %1033 }
 0x889   : > { %3565 = vpow2.f32 %v1025_v39 }
 0x88a   : > { %3567 = vrcp.f32 %v1034_v40 }
 0x893   : > { %v3566_v41 = vpop.eup %3565 }
 0x894   : > { %v3568_v42 = vpop.eup %3567  ;;  %v1029_v43 = vsel %vm474_vm3, %v3566_v41, 0.0 }
 0x895   : > { %v1038_v44 = vmul.f32 %v3568_v42, %v3564_v33  ;;  %1030 = vadd.xlane.f32.xlu0 %v1029_v43 }
 0x897   : > { %v1040_v46 = vpack.c.bf16 %v1038_v44, %v1038_v44 }
 0x899   : > { %3283 = vmatmul.mubr.msk.bf16.vlgmr.msra.gmra.mrb[32].mxu0 %vm474_vm3, %v1040_v46 }
 0x89a   : > { %3293 = vmatpush3.bf16.xpose.msra.mxu0 %v1195_v47  ;;  %3294 = vmatprep.mubr.msk.bf16.mxu0 %vm3698_vm1, %v3697_v7 }
 0x89b   : > { %3304 = vmatprep.subr.bf16.mxu0 %v3697_v7 }
 0x8ab   : > { %1041 = vrot.lane.b32.xlu0 %v3844_v25, %s3706_s20  ;;  %s3715_s20 = smov 44  }
 0x8af   : > { %1187 = vrot.lane.b32.xlu0 %v3844_v25, %s3708_s22  ;;  %s3717_s22 = smov 104  }
 0x922   : > { %v1031_v48 = vpop.xlane.xlu0 %1030 }
 0x923   : > { %3569 = vrcp.f32 %v1031_v48 }
 0x926   : > { %v1042_v49 = vpop.permute.xlu0 %1041 }
 0x927   : > { %v1047_v50 = vsel %vm504_vm4, %v1042_v49, 0  ;;  %v3028_v49 = vcombine.low %v3980_v59, %v3980_v59 }
 0x928   : > { %3275 = vmatpush3.bf16.msra.mxu1 %v1047_v50 }
 0x929   : > { %3286 = vmatprep.subr.bf16.mxu1 %v3697_v7  ;;  %v1411_v50 = vrot.slane %v3028_v49, 2 }
 0x92a   : > { %v1188_v51 = vpop.permute.xlu0 %1187 }
 0x92b   : > { %3295 = vmatmul.mubr.msk.bf16.vlgmr.msra.gmra.mrb[36].mxu0 %vm378_vm2, %v1188_v51  ;;  %v1416_v51 = vsel %vm825_vm5, %v1411_v50, 0 }
 0x92c   : > { %3306 = vmatprep.mubr.msk.bf16.mxu0 %vm3698_vm1, %v3697_v7 }
 0x92d   : > { %v3570_v52 = vpop.eup %3569 }
 0x92e   : > { %v1037_v53 = vmul.f32 %v3570_v52, %v3566_v41 }
 0x930   : > { %v1039_v54 = vpack.c.bf16 %v1037_v53, %v1037_v53 }
 0x932   : > { %3277 = vmatmul.mubr.msk.bf16.vlgmr.msra.gmra.mrb[20].mxu1 %vm474_vm3, %v1039_v54 }
 0x933   : > { %3288 = vmatprep.mubr.msk.bf16.mxu1 %vm3698_vm1, %v3697_v7  ;;  %3287 = vmatpush3.bf16.msra.mxu1 %v1142_v60 }
 0x934   : > { %3298 = vmatprep.subr.bf16.mxu1 %v3697_v7 }
 0x96c   : > { %v1131_v55 = vpop.f32.mrb[32].mxu0 }
 0x96d   : > { %v3284_v56 = vpop.f32.mrb[33].mxu0 }
 0x96e   : > { %v1134_v57 = vpop.f32.mrb[34].mxu0 }
 0x96f   : > { %v3285_v58 = vpop.f32.mrb[35].mxu0 }
 0x9fe   : > { %v1231_v61 = vpop.f32.mrb[36].mxu0 }
 0x9ff   : > { %v3296_v62 = vpop.f32.mrb[37].mxu0  ;;  %v1287_v63 = vsel %vm474_vm3, %v1231_v61, -inf }
 0xa00   : > { %1288 = vmax.xlane.f32.xlu0 %v1287_v63  ;;  %v1234_v0 = vpop.f32.mrb[38].mxu0 }
 0xa01   : > { %v3297_v1 = vpop.f32.mrb[39].mxu0 }
 0xa05   : > { %v1083_v3 = vpop.f32.mrb[20].mxu1 }
 0xa06   : > { %v1137_v4 = vpack.c.bf16 %v1131_v55, %v1083_v3  ;;  %v3278_v5 = vpop.f32.mrb[21].mxu1 }
 0xa07   : > { %v1086_v6 = vpop.f32.mrb[22].mxu1 }
 0xa08   : > { %v3279_v9 = vpop.f32.mrb[23].mxu1  ;;  %3289 = vmatmul.mubr.msk.bf16.vlgmr.msra.gmra.mrb[24].mxu1 %vm378_vm2, %v1137_v4 }
 0xa09   : > { %3299 = vmatpush3.bf16.xpose.msra.mxu1 %v1245_v8  ;;  %3300 = vmatprep.mubr.msk.bf16.mxu1 %vm3698_vm1, %v3697_v7 }
 0xa0a   : > { %3310 = vmatprep.subr.bf16.mxu1 %v3697_v7 }
 0xa10   : > { %3301 = vmatmul.mubr.msk.bf16.vlgmr.msra.gmra.mrb[28].mxu1 %vm378_vm2, %v1238_v10 }
 0xa11   : > { %3312 = vmatprep.mubr.msk.bf16.mxu1 %vm3698_vm1, %v3697_v7 }
 0xa8d   : > { %v1289_v11 = vpop.xlane.xlu0 %1288 }
 0xa8e   : > { %v1293_v12 = vsub.f32 %v1231_v61, %v1289_v11 }
 0xa90   : > { %v1295_v13 = vmul.f32 1.442695, %v1293_v12 }
 0xa92   : > { %3571 = vpow2.f32 %v1295_v13 }
 0xa9c   : > { %v3572_v14 = vpop.eup %3571 }
 0xa9d   : > { %v1299_v15 = vsel %vm474_vm3, %v3572_v14, 0.0 }
 0xa9e   : > { %1300 = vadd.xlane.f32.xlu0 %v1299_v15 }
 0xadb   : > { %v1178_v16 = vpop.f32.mrb[24].mxu1 }
 0xadc   : > { %v3996_v17 = vadd.f32 %v1178_v16, %v3953_v23  ;;  %v3290_v18 = vpop.f32.mrb[25].mxu1 }
 0xadd   : > { %v1181_v19 = vpop.f32.mrb[26].mxu1 }
 0xade   : > { %v3999_v20 = vadd.f32 %v1181_v19, %v3955_v27  ;;  %v3291_v21 = vpop.f32.mrb[27].mxu1 }
 0xae3   : > { %v1281_v22 = vpop.f32.mrb[28].mxu1 }
 0xae4   : > { %v3302_v24 = vpop.f32.mrb[29].mxu1  ;;  %v1290_v26 = vsel %vm474_vm3, %v1281_v22, -inf }
 0xae5   : > { %1291 = vmax.xlane.f32.xlu1 %v1290_v26  ;;  %v1284_v29 = vpop.f32.mrb[30].mxu1 }
 0xae6   : > { %v3303_v30 = vpop.f32.mrb[31].mxu1 }
 0xaf6   : > { %1359 = vrot.lane.b32.xlu1 %v3847_v28, %s3709_s8 }
 0xafa   : > { %1463 = vrot.lane.b32.xlu1 %v3844_v25, %s3710_s9 }
 0xafe   : > { %1513 = vrot.lane.b32.xlu1 %v3847_v28, %s3710_s9 }
 0xb02   : > { %1511 = vrot.lane.b32.xlu1 %v3847_v28, %s3711_s13 }
 0xb2b   : > { %v1301_v36 = vpop.xlane.xlu0 %1300 }
 0xb72   : > { %v1292_v23 = vpop.xlane.xlu1 %1291 }
 0xb73   : > { %v1294_v27 = vsub.f32 %v1281_v22, %v1292_v23 }
 0xb75   : > { %v1297_v31 = vmul.f32 1.442695, %v1294_v27 }
 0xb76   : > { %v1360_v32 = vpop.permute.xlu1 %1359 }
 0xb77   : > { %3573 = vpow2.f32 %v1297_v31  ;;  %v1365_v33 = vsel %vm504_vm4, %v1360_v32, 0 }
 0xb78   : > { %3311 = vmatpush3.bf16.msra.mxu1 %v1365_v33  ;;  %3575 = vrcp.f32 %v1301_v36 }
 0xb79   : > { %3322 = vmatprep.subr.bf16.mxu1 %v3697_v7 }
 0xb7a   : > { %v1464_v45 = vpop.permute.xlu1 %1463 }
 0xb7b   : > { %v1469_v47 = vsel %vm378_vm2, %v1464_v45, 0 }
 0xb7e   : > { %v1514_v56 = vpop.permute.xlu1 %1513 }
 0xb7f   : > { %v1519_v62 = vsel %vm378_vm2, %v1514_v56, 0 }
 0xb81   : > { %v3574_v34 = vpop.eup %3573 }
 0xb82   : > { %v1302_v35 = vsel %vm474_vm3, %v3574_v34, 0.0  ;;  %v3576_v37 = vpop.eup %3575  ;;  %v1512_v2 = vpop.permute.xlu1 %1511 }
 0xb83   : > { %1303 = vadd.xlane.f32.xlu0 %v1302_v35  ;;  %v1307_v39 = vmul.f32 %v3576_v37, %v3572_v14 }
 0xb85   : > { %v1309_v42 = vpack.c.bf16 %v1307_v39, %v1307_v39 }
 0xb99   : > { %1311 = vrot.lane.b32.xlu0 %v3844_v25, %s3709_s8  ;;  %s3720_s8 = smov 100  }
 0xb9d   : > { %1461 = vrot.lane.b32.xlu0 %v3844_v25, %s3711_s13  ;;  %s3088_s13 = sshll.u32 %s3787_s28, 8 }
 0xc10   : > { %v1304_v38 = vpop.xlane.xlu0 %1303 }
 0xc11   : > { %3577 = vrcp.f32 %v1304_v38 }
 0xc14   : > { %v1312_v40 = vpop.permute.xlu0 %1311 }
 0xc15   : > { %v1317_v41 = vsel %vm504_vm4, %v1312_v40, 0 }
 0xc16   : > { %3305 = vmatpush3.bf16.msra.mxu0 %v1317_v41 }
 0xc17   : > { %3316 = vmatprep.subr.bf16.mxu0 %v3697_v7 }
 0xc18   : > { %v1462_v48 = vpop.permute.xlu0 %1461 }
 0xc19   : > { %3307 = vmatmul.mubr.msk.bf16.vlgmr.msra.gmra.mrb[40].mxu0 %vm474_vm3, %v1309_v42 }
 0xc1a   : > { %3318 = vmatprep.mubr.msk.bf16.mxu0 %vm3698_vm1, %v3697_v7  ;;  %3317 = vmatpush3.bf16.msra.mxu0 %v1416_v51 }
 0xc1b   : > { %v3578_v43 = vpop.eup %3577  ;;  %3328 = vmatprep.subr.bf16.mxu0 %v3697_v7 }
 0xc1c   : > { %v1308_v44 = vmul.f32 %v3578_v43, %v3574_v34 }
 0xc1e   : > { %v1310_v46 = vpack.c.bf16 %v1308_v44, %v1308_v44  ;;  %v4070_v44 = vld [vmem:[%s4340_s3 + $0x8] sm:$0xf] }
 0xc1f   : > { %v1686_v45 = vsel %vm825_vm5, %v4070_v44, 0 }
 0xc20   : > { %3313 = vmatmul.mubr.msk.bf16.vlgmr.msra.gmra.mrb[32].mxu1 %vm474_vm3, %v1310_v46 }
 0xc21   : > { %3323 = vmatpush3.bf16.xpose.msra.mxu1 %v1469_v47  ;;  %3324 = vmatprep.mubr.msk.bf16.mxu1 %vm3698_vm1, %v3697_v7 }
 0xc22   : > { %3334 = vmatprep.subr.bf16.mxu1 %v3697_v7 }
 0xc28   : > { %3325 = vmatmul.mubr.msk.bf16.vlgmr.msra.gmra.mrb[36].mxu1 %vm378_vm2, %v1462_v48 }
 0xc29   : > { %3336 = vmatprep.mubr.msk.bf16.mxu1 %vm3698_vm1, %v3697_v7 }
 0xcec   : > { %v1353_v52 = vpop.f32.mrb[40].mxu0 }
 0xced   : > { %v3308_v53 = vpop.f32.mrb[41].mxu0 }
 0xcee   : > { %v1356_v54 = vpop.f32.mrb[42].mxu0 }
 0xcef   : > { %v3309_v55 = vpop.f32.mrb[43].mxu0 }
 0xcf3   : > { %v1401_v57 = vpop.f32.mrb[32].mxu1 }
 0xcf4   : > { %v1407_v58 = vpack.c.bf16 %v1401_v57, %v1353_v52  ;;  %v3314_v60 = vpop.f32.mrb[33].mxu1 }
 0xcf5   : > { %v1404_v61 = vpop.f32.mrb[34].mxu1 }
 0xcf6   : > { %v3315_v63 = vpop.f32.mrb[35].mxu1  ;;  %3319 = vmatmul.mubr.msk.bf16.vlgmr.msra.gmra.mrb[44].mxu0 %vm378_vm2, %v1407_v58 }
 0xcf7   : > { %3329 = vmatpush3.bf16.xpose.msra.mxu0 %v1519_v62  ;;  %3330 = vmatprep.mubr.msk.bf16.mxu0 %vm3698_vm1, %v3697_v7 }
 0xcf8   : > { %3340 = vmatprep.subr.bf16.mxu0 %v3697_v7 }
 0xcfb   : > { %v1505_v59 = vpop.f32.mrb[36].mxu1 }
 0xcfc   : > { %v3326_v0 = vpop.f32.mrb[37].mxu1  ;;  %v1561_v1 = vsel %vm474_vm3, %v1505_v59, -inf }
 0xcfd   : > { %1562 = vmax.xlane.f32.xlu0 %v1561_v1  ;;  %v1508_v3 = vpop.f32.mrb[38].mxu1 }
 0xcfe   : > { %v3327_v4 = vpop.f32.mrb[39].mxu1  ;;  %3331 = vmatmul.mubr.msk.bf16.vlgmr.msra.gmra.mrb[48].mxu0 %vm378_vm2, %v1512_v2 }
 0xcff   : > { %3342 = vmatprep.mubr.msk.bf16.mxu0 %vm3698_vm1, %v3697_v7 }
 0xd8a   : > { %v1563_v5 = vpop.xlane.xlu0 %1562 }
 0xd8b   : > { %v1567_v6 = vsub.f32 %v1505_v59, %v1563_v5 }
 0xd8d   : > { %v1569_v8 = vmul.f32 1.442695, %v1567_v6 }
 0xd8f   : > { %3579 = vpow2.f32 %v1569_v8 }
 0xd99   : > { %v3580_v9 = vpop.eup %3579 }
 0xd9a   : > { %v1573_v10 = vsel %vm474_vm3, %v3580_v9, 0.0 }
 0xd9b   : > { %1574 = vadd.xlane.f32.xlu0 %v1573_v10 }
 0xdc9   : > { %v1452_v11 = vpop.f32.mrb[44].mxu0 }
 0xdca   : > { %v4039_v12 = vadd.f32 %v1452_v11, %v3996_v17  ;;  %v3320_v13 = vpop.f32.mrb[45].mxu0 }
 0xdcb   : > { %v1455_v14 = vpop.f32.mrb[46].mxu0 }
 0xdcc   : > { %v4042_v15 = vadd.f32 %v1455_v14, %v3999_v20  ;;  %v3321_v16 = vpop.f32.mrb[47].mxu0 }
 0xdd1   : > { %v1555_v18 = vpop.f32.mrb[48].mxu0 }
 0xdd2   : > { %v3332_v19 = vpop.f32.mrb[49].mxu0  ;;  %v1564_v21 = vsel %vm474_vm3, %v1555_v18, -inf }
 0xdd3   : > { %1565 = vmax.xlane.f32.xlu1 %v1564_v21  ;;  %v1558_v22 = vpop.f32.mrb[50].mxu0 }
 0xdd4   : > { %v3333_v24 = vpop.f32.mrb[51].mxu0 }
 0xde4   : > { %1633 = vrot.lane.b32.xlu1 %v3847_v28, %s3712_s14 }
 0xde8   : > { %1733 = vrot.lane.b32.xlu1 %v3844_v25, %s3713_s15 }
 0xdec   : > { %1783 = vrot.lane.b32.xlu1 %v3847_v28, %s3713_s15 }
 0xdf0   : > { %1781 = vrot.lane.b32.xlu1 %v3847_v28, %s3714_s16 }
 0xe28   : > { %v1575_v31 = vpop.xlane.xlu0 %1574 }
 0xe60   : > { %v1566_v17 = vpop.xlane.xlu1 %1565 }
 0xe61   : > { %v1568_v20 = vsub.f32 %v1555_v18, %v1566_v17 }
 0xe63   : > { %v1571_v26 = vmul.f32 1.442695, %v1568_v20 }
 0xe64   : > { %v1634_v29 = vpop.permute.xlu1 %1633 }
 0xe65   : > { %3581 = vpow2.f32 %v1571_v26  ;;  %v1639_v30 = vsel %vm504_vm4, %v1634_v29, 0 }
 0xe66   : > { %3341 = vmatpush3.bf16.msra.mxu0 %v1639_v30  ;;  %3583 = vrcp.f32 %v1575_v31 }
 0xe67   : > { %3352 = vmatprep.subr.bf16.mxu0 %v3697_v7 }
 0xe68   : > { %v1734_v40 = vpop.permute.xlu1 %1733 }
 0xe69   : > { %v1739_v42 = vsel %vm378_vm2, %v1734_v40, 0 }
 0xe6c   : > { %v1784_v50 = vpop.permute.xlu1 %1783 }
 0xe6d   : > { %v1789_v55 = vsel %vm378_vm2, %v1784_v50, 0 }
 0xe6f   : > { %v3582_v23 = vpop.eup %3581 }
 0xe70   : > { %v1576_v27 = vsel %vm474_vm3, %v3582_v23, 0.0  ;;  %v3584_v32 = vpop.eup %3583  ;;  %v1782_v61 = vpop.permute.xlu1 %1781 }
 0xe71   : > { %1577 = vadd.xlane.f32.xlu0 %v1576_v27  ;;  %v1581_v34 = vmul.f32 %v3584_v32, %v3580_v9 }
 0xe73   : > { %v1583_v37 = vpack.c.bf16 %v1581_v34, %v1581_v34 }
 0xe87   : > { %1585 = vrot.lane.b32.xlu0 %v3844_v25, %s3712_s14  ;;  %s3721_s14 = smov 36  }
 0xe8b   : > { %1731 = vrot.lane.b32.xlu0 %v3844_v25, %s3714_s16  ;;  %s4289_s16 = scalar_lea.hbm %s4344_s7, %s3088_s13 }
 0xefe   : > { %v1578_v33 = vpop.xlane.xlu0 %1577 }
 0xeff   : > { %3585 = vrcp.f32 %v1578_v33 }
 0xf02   : > { %v1586_v35 = vpop.permute.xlu0 %1585 }
 0xf03   : > { %v1591_v36 = vsel %vm504_vm4, %v1586_v35, 0 }
 0xf04   : > { %3335 = vmatpush3.bf16.msra.mxu1 %v1591_v36 }
 0xf05   : > { %3346 = vmatprep.subr.bf16.mxu1 %v3697_v7 }
 0xf06   : > { %v1732_v43 = vpop.permute.xlu0 %1731 }
 0xf07   : > { %3337 = vmatmul.mubr.msk.bf16.vlgmr.msra.gmra.mrb[40].mxu1 %vm474_vm3, %v1583_v37 }
 0xf08   : > { %3348 = vmatprep.mubr.msk.bf16.mxu1 %vm3698_vm1, %v3697_v7  ;;  %3347 = vmatpush3.bf16.msra.mxu1 %v1686_v45 }
 0xf09   : > { %v3586_v38 = vpop.eup %3585  ;;  %3358 = vmatprep.subr.bf16.mxu1 %v3697_v7 }
 0xf0a   : > { %v1582_v39 = vmul.f32 %v3586_v38, %v3582_v23  ;;  %v3039_v38 = vcombine.low %v4070_v44, %v4070_v44 }
 0xf0c   : > { %v1584_v41 = vpack.c.bf16 %v1582_v39, %v1582_v39  ;;  %v1955_v39 = vrot.slane %v3039_v38, 2 }
 0xf0e   : > { %3343 = vmatmul.mubr.msk.bf16.vlgmr.msra.gmra.mrb[52].mxu0 %vm474_vm3, %v1584_v41  ;;  %v1960_v40 = vsel %vm825_vm5, %v1955_v39, 0 }
 0xf0f   : > { %3353 = vmatpush3.bf16.xpose.msra.mxu0 %v1739_v42  ;;  %3354 = vmatprep.mubr.msk.bf16.mxu0 %vm3698_vm1, %v3697_v7 }
 0xf10   : > { %3364 = vmatprep.subr.bf16.mxu0 %v3697_v7 }
 0xf16   : > { %3355 = vmatmul.mubr.msk.bf16.vlgmr.msra.gmra.mrb[56].mxu0 %vm378_vm2, %v1732_v43 }
 0xf17   : > { %3366 = vmatprep.mubr.msk.bf16.mxu0 %vm3698_vm1, %v3697_v7 }
 0xfda   : > { %v1627_v46 = vpop.f32.mrb[40].mxu1 }
 0xfdb   : > { %v3338_v47 = vpop.f32.mrb[41].mxu1 }
 0xfdc   : > { %v1630_v48 = vpop.f32.mrb[42].mxu1 }
 0xfdd   : > { %v3339_v49 = vpop.f32.mrb[43].mxu1 }
 0xfe1   : > { %v1675_v51 = vpop.f32.mrb[52].mxu0 }
 0xfe2   : > { %v1681_v52 = vpack.c.bf16 %v1675_v51, %v1627_v46  ;;  %v3344_v53 = vpop.f32.mrb[53].mxu0 }
 0xfe3   : > { %v1678_v54 = vpop.f32.mrb[54].mxu0 }
 0xfe4   : > { %v3345_v56 = vpop.f32.mrb[55].mxu0  ;;  %3349 = vmatmul.mubr.msk.bf16.vlgmr.msra.gmra.mrb[44].mxu1 %vm378_vm2, %v1681_v52 }
 0xfe5   : > { %3359 = vmatpush3.bf16.xpose.msra.mxu1 %v1789_v55  ;;  %3360 = vmatprep.mubr.msk.bf16.mxu1 %vm3698_vm1, %v3697_v7 }
 0xfe6   : > { %3370 = vmatprep.subr.bf16.mxu1 %v3697_v7 }
 0xfe9   : > { %v1775_v57 = vpop.f32.mrb[56].mxu0 }
 0xfea   : > { %v3356_v58 = vpop.f32.mrb[57].mxu0  ;;  %v1831_v60 = vsel %vm474_vm3, %v1775_v57, -inf }
 0xfeb   : > { %1832 = vmax.xlane.f32.xlu0 %v1831_v60  ;;  %v1778_v62 = vpop.f32.mrb[58].mxu0 }
 0xfec   : > { %v3357_v63 = vpop.f32.mrb[59].mxu0  ;;  %3361 = vmatmul.mubr.msk.bf16.vlgmr.msra.gmra.mrb[48].mxu1 %vm378_vm2, %v1782_v61 }
 0xfed   : > { %3372 = vmatprep.mubr.msk.bf16.mxu1 %vm3698_vm1, %v3697_v7 }
0x1078   : > { %v1833_v59 = vpop.xlane.xlu0 %1832 }
0x1079   : > { %v1837_v0 = vsub.f32 %v1775_v57, %v1833_v59 }
0x107b   : > { %v1839_v1 = vmul.f32 1.442695, %v1837_v0 }
0x107d   : > { %3587 = vpow2.f32 %v1839_v1 }
0x1087   : > { %v3588_v2 = vpop.eup %3587 }
0x1088   : > { %v1843_v3 = vsel %vm474_vm3, %v3588_v2, 0.0 }
0x1089   : > { %1844 = vadd.xlane.f32.xlu0 %v1843_v3 }
0x10b7   : > { %v1722_v4 = vpop.f32.mrb[44].mxu1 }
0x10b8   : > { %v4086_v5 = vadd.f32 %v1722_v4, %v4039_v12  ;;  %v3350_v6 = vpop.f32.mrb[45].mxu1 }
0x10b9   : > { %v1725_v8 = vpop.f32.mrb[46].mxu1 }
0x10ba   : > { %v4089_v9 = vadd.f32 %v1725_v8, %v4042_v15  ;;  %v3351_v10 = vpop.f32.mrb[47].mxu1 }
0x10bf   : > { %v1825_v11 = vpop.f32.mrb[48].mxu1 }
0x10c0   : > { %v3362_v13 = vpop.f32.mrb[49].mxu1  ;;  %v1834_v14 = vsel %vm474_vm3, %v1825_v11, -inf }
0x10c1   : > { %1835 = vmax.xlane.f32.xlu1 %v1834_v14  ;;  %v1828_v16 = vpop.f32.mrb[50].mxu1 }
0x10c2   : > { %v3363_v18 = vpop.f32.mrb[51].mxu1 }
0x10d2   : > { %1903 = vrot.lane.b32.xlu1 %v3847_v28, %s3715_s20 }
0x10d6   : > { %2007 = vrot.lane.b32.xlu1 %v3844_v25, %s3716_s21 }
0x10da   : > { %2057 = vrot.lane.b32.xlu1 %v3847_v28, %s3716_s21 }
0x10de   : > { %2055 = vrot.lane.b32.xlu1 %v3847_v28, %s3717_s22 }
0x1116   : > { %v1845_v20 = vpop.xlane.xlu0 %1844 }
0x114e   : > { %v1836_v12 = vpop.xlane.xlu1 %1835 }
0x114f   : > { %v1838_v15 = vsub.f32 %v1825_v11, %v1836_v12 }
0x1151   : > { %v1841_v19 = vmul.f32 1.442695, %v1838_v15 }
0x1152   : > { %v1904_v21 = vpop.permute.xlu1 %1903 }
0x1153   : > { %3589 = vpow2.f32 %v1841_v19  ;;  %v1909_v22 = vsel %vm504_vm4, %v1904_v21, 0 }
0x1154   : > { %3371 = vmatpush3.bf16.msra.mxu1 %v1909_v22  ;;  %3591 = vrcp.f32 %v1845_v20 }
0x1155   : > { %3382 = vmatprep.subr.bf16.mxu1 %v3697_v7 }
0x1156   : > { %v2008_v34 = vpop.permute.xlu1 %2007 }
0x1157   : > { %v2013_v36 = vsel %vm378_vm2, %v2008_v34, 0 }
0x115a   : > { %v2058_v46 = vpop.permute.xlu1 %2057 }
0x115b   : > { %v2063_v51 = vsel %vm378_vm2, %v2058_v46, 0 }
0x115d   : > { %v3590_v24 = vpop.eup %3589 }
0x115e   : > { %v1846_v17 = vsel %vm474_vm3, %v3590_v24, 0.0  ;;  %v3592_v26 = vpop.eup %3591  ;;  %v2056_v55 = vpop.permute.xlu1 %2055 }
0x115f   : > { %1847 = vadd.xlane.f32.xlu0 %v1846_v17  ;;  %v1851_v30 = vmul.f32 %v3592_v26, %v3588_v2 }
0x1161   : > { %v1853_v31 = vpack.c.bf16 %v1851_v30, %v1851_v30 }
0x1175   : > { %1855 = vrot.lane.b32.xlu0 %v3844_v25, %s3715_s20  ;;  %s3637_s20 = sshll.u32 %s3723_s19, 4  ;;  %s3638_s20 = int_to_ptr.vmem [resolvable:$false] %s3637_s20 }
0x1179   : > { %2005 = vrot.lane.b32.xlu0 %v3844_v25, %s3717_s22 }
0x11ec   : > { %v1848_v29 = vpop.xlane.xlu0 %1847 }
0x11ed   : > { %3593 = vrcp.f32 %v1848_v29 }
0x11f0   : > { %v1856_v23 = vpop.permute.xlu0 %1855 }
0x11f1   : > { %v1861_v27 = vsel %vm504_vm4, %v1856_v23, 0 }
0x11f2   : > { %3365 = vmatpush3.bf16.msra.mxu0 %v1861_v27 }
0x11f3   : > { %3376 = vmatprep.subr.bf16.mxu0 %v3697_v7 }
0x11f4   : > { %v2006_v37 = vpop.permute.xlu0 %2005 }
0x11f5   : > { %3367 = vmatmul.mubr.msk.bf16.vlgmr.msra.gmra.mrb[60].mxu0 %vm474_vm3, %v1853_v31 }
0x11f6   : > { %3378 = vmatprep.mubr.msk.bf16.mxu0 %vm3698_vm1, %v3697_v7  ;;  %3377 = vmatpush3.bf16.msra.mxu0 %v1960_v40 }
0x11f7   : > { %v3594_v32 = vpop.eup %3593  ;;  %3388 = vmatprep.subr.bf16.mxu0 %v3697_v7 }
0x11f8   : > { %v1852_v33 = vmul.f32 %v3594_v32, %v3590_v24 }
0x11fa   : > { %v1854_v35 = vpack.c.bf16 %v1852_v33, %v1852_v33  ;;  %v4160_v33 = vld [vmem:[%s4340_s3 + $0xc] sm:$0xf] }
0x11fb   : > { %v2230_v34 = vsel %vm825_vm5, %v4160_v33, 0 }
0x11fc   : > { %3373 = vmatmul.mubr.msk.bf16.vlgmr.msra.gmra.mrb[52].mxu1 %vm474_vm3, %v1854_v35 }
0x11fd   : > { %3383 = vmatpush3.bf16.xpose.msra.mxu1 %v2013_v36  ;;  %3384 = vmatprep.mubr.msk.bf16.mxu1 %vm3698_vm1, %v3697_v7 }
0x11fe   : > { %3394 = vmatprep.subr.bf16.mxu1 %v3697_v7 }
0x1204   : > { %3385 = vmatmul.mubr.msk.bf16.vlgmr.msra.gmra.mrb[56].mxu1 %vm378_vm2, %v2006_v37 }
0x1205   : > { %3396 = vmatprep.mubr.msk.bf16.mxu1 %vm3698_vm1, %v3697_v7 }
0x12c8   : > { %v1897_v41 = vpop.f32.mrb[60].mxu0 }
0x12c9   : > { %v3368_v42 = vpop.f32.mrb[61].mxu0 }
0x12ca   : > { %v1900_v43 = vpop.f32.mrb[62].mxu0 }
0x12cb   : > { %v3369_v45 = vpop.f32.mrb[63].mxu0 }
0x12cf   : > { %v1945_v47 = vpop.f32.mrb[52].mxu1 }
0x12d0   : > { %v1951_v48 = vpack.c.bf16 %v1945_v47, %v1897_v41  ;;  %v3374_v49 = vpop.f32.mrb[53].mxu1 }
0x12d1   : > { %v1948_v50 = vpop.f32.mrb[54].mxu1 }
0x12d2   : > { %v3375_v52 = vpop.f32.mrb[55].mxu1  ;;  %3379 = vmatmul.mubr.msk.bf16.vlgmr.msra.gmra.mrb[64].mxu0 %vm378_vm2, %v1951_v48 }
0x12d3   : > { %3389 = vmatpush3.bf16.xpose.msra.mxu0 %v2063_v51  ;;  %3390 = vmatprep.mubr.msk.bf16.mxu0 %vm3698_vm1, %v3697_v7 }
0x12d4   : > { %3400 = vmatprep.subr.bf16.mxu0 %v3697_v7 }
0x12d7   : > { %v2049_v44 = vpop.f32.mrb[56].mxu1 }
0x12d8   : > { %v3386_v53 = vpop.f32.mrb[57].mxu1  ;;  %v2105_v54 = vsel %vm474_vm3, %v2049_v44, -inf }
0x12d9   : > { %2106 = vmax.xlane.f32.xlu0 %v2105_v54  ;;  %v2052_v56 = vpop.f32.mrb[58].mxu1 }
0x12da   : > { %v3387_v57 = vpop.f32.mrb[59].mxu1  ;;  %3391 = vmatmul.mubr.msk.bf16.vlgmr.msra.gmra.mrb[68].mxu0 %vm378_vm2, %v2056_v55 }
0x12db   : > { %3402 = vmatprep.mubr.msk.bf16.mxu0 %vm3698_vm1, %v3697_v7 }
0x1366   : > { %v2107_v58 = vpop.xlane.xlu0 %2106 }
0x1367   : > { %v2111_v60 = vsub.f32 %v2049_v44, %v2107_v58 }
0x1369   : > { %v2113_v61 = vmul.f32 1.442695, %v2111_v60 }
0x136b   : > { %3595 = vpow2.f32 %v2113_v61 }
0x1375   : > { %v3596_v62 = vpop.eup %3595 }
0x1376   : > { %v2117_v63 = vsel %vm474_vm3, %v3596_v62, 0.0 }
0x1377   : > { %2118 = vadd.xlane.f32.xlu0 %v2117_v63 }
0x13a5   : > { %v1996_v59 = vpop.f32.mrb[64].mxu0 }
0x13a6   : > { %v4129_v0 = vadd.f32 %v1996_v59, %v4086_v5  ;;  %v3380_v1 = vpop.f32.mrb[65].mxu0 }
0x13a7   : > { %v1999_v2 = vpop.f32.mrb[66].mxu0 }
0x13a8   : > { %v4132_v3 = vadd.f32 %v1999_v2, %v4089_v9  ;;  %v3381_v4 = vpop.f32.mrb[67].mxu0 }
0x13ad   : > { %v2099_v6 = vpop.f32.mrb[68].mxu0 }
0x13ae   : > { %v3392_v8 = vpop.f32.mrb[69].mxu0  ;;  %v2108_v10 = vsel %vm474_vm3, %v2099_v6, -inf }
0x13af   : > { %2109 = vmax.xlane.f32.xlu1 %v2108_v10  ;;  %v2102_v11 = vpop.f32.mrb[70].mxu0 }
0x13b0   : > { %v3393_v13 = vpop.f32.mrb[71].mxu0 }
0x13c0   : > { %2177 = vrot.lane.b32.xlu1 %v3847_v28, %s3718_s23 }
0x13c4   : > { %2277 = vrot.lane.b32.xlu1 %v3844_v25, %s3719_s29 }
0x13c8   : > { %2327 = vrot.lane.b32.xlu1 %v3847_v28, %s3719_s29 }
0x13cc   : > { %2325 = vrot.lane.b32.xlu1 %v3847_v28, %s3720_s8 }
0x1404   : > { %v2119_v19 = vpop.xlane.xlu0 %2118 }
0x143c   : > { %v2110_v5 = vpop.xlane.xlu1 %2109 }
0x143d   : > { %v2112_v9 = vsub.f32 %v2099_v6, %v2110_v5 }
0x143f   : > { %v2115_v14 = vmul.f32 1.442695, %v2112_v9 }
0x1440   : > { %v2178_v16 = vpop.permute.xlu1 %2177 }
0x1441   : > { %3597 = vpow2.f32 %v2115_v14  ;;  %v2183_v18 = vsel %vm504_vm4, %v2178_v16, 0 }
0x1442   : > { %3401 = vmatpush3.bf16.msra.mxu0 %v2183_v18  ;;  %3599 = vrcp.f32 %v2119_v19 }
0x1443   : > { %3412 = vmatprep.subr.bf16.mxu0 %v3697_v7 }
0x1444   : > { %v2278_v23 = vpop.permute.xlu1 %2277 }
0x1445   : > { %v2283_v31 = vsel %vm378_vm2, %v2278_v23, 0 }
0x1448   : > { %v2328_v39 = vpop.permute.xlu1 %2327 }
0x1449   : > { %v2333_v45 = vsel %vm378_vm2, %v2328_v39, 0 }
0x144b   : > { %v3598_v12 = vpop.eup %3597 }
0x144c   : > { %v2120_v15 = vsel %vm474_vm3, %v3598_v12, 0.0  ;;  %v3600_v21 = vpop.eup %3599  ;;  %v2326_v50 = vpop.permute.xlu1 %2325 }
0x144d   : > { %2121 = vadd.xlane.f32.xlu0 %v2120_v15  ;;  %v2125_v24 = vmul.f32 %v3600_v21, %v3596_v62 }
0x144f   : > { %v2127_v26 = vpack.c.bf16 %v2125_v24, %v2125_v24 }
0x1463   : > { %2129 = vrot.lane.b32.xlu0 %v3844_v25, %s3718_s23  ;;  %s270_s23 = sand.u32 1, %s3687_s25  }
0x1464   : > { %s3001_s29 = sshll.u32 %s270_s23, 4  ;;  %s4296_s28 = scalar_lea.sflag [#allocation3], %s270_s23 }
0x1467   : > { %2275 = vrot.lane.b32.xlu0 %v3844_v25, %s3720_s8  ;;  %s272_s8 = scalar_lea.vmem [#allocation2], %s3001_s29 }
0x1468   : > { %s2935_s9 = sshll.u32 %s272_s8, 4  ;;  %s4291_s9 = int_to_ptr.vmem [resolvable:$true] %s2935_s9 }
0x1469   : > { %s3633_s18 = scalar_lea.vmem %s4291_s9, 256  ;;  %p3640_p0 = scmp.lt.s32.totalorder %s4291_s9, %s3638_s20 }
0x146a   : > { %p3634_p11 = scmp.ne.s32.totalorder %s4291_s9, %s3633_s18 }
0x146c   : > { %p3635_p12 = pnand %p3634_p11, %p3804_p5 }
0x146e   : > { %p3636_p13 = pneg %p3635_p12 }
0x14da   : > { %v2122_v22 = vpop.xlane.xlu0 %2121 }
0x14db   : > { %3601 = vrcp.f32 %v2122_v22  ;;  %v3050_v22 = vcombine.low %v4160_v33, %v4160_v33  ;;  %v3052_v33 = vld [vmem:[%s4341_s4] ss:$0 sm:$0xff] }
0x14dd   : > { %v2499_v24 = vrot.slane %v3050_v22, 2  ;;  %v3542_v22 = vld [vmem:[%s4343_s6 + $0x38] sm:$0xff]  }
0x14de   : > { %v2130_v17 = vpop.permute.xlu0 %2129 }
0x14df   : > { %v2135_v20 = vsel %vm504_vm4, %v2130_v17, 0  ;;  %v2504_v17 = vsel %vm825_vm5, %v2499_v24, 0 }
0x14e0   : > { %3395 = vmatpush3.bf16.msra.mxu1 %v2135_v20 }
0x14e1   : > { %3406 = vmatprep.subr.bf16.mxu1 %v3697_v7 }
0x14e2   : > { %v2276_v32 = vpop.permute.xlu0 %2275 }
0x14e3   : > { %3397 = vmatmul.mubr.msk.bf16.vlgmr.msra.gmra.mrb[60].mxu1 %vm474_vm3, %v2127_v26 }
0x14e4   : > { %3408 = vmatprep.mubr.msk.bf16.mxu1 %vm3698_vm1, %v3697_v7  ;;  %3407 = vmatpush3.bf16.msra.mxu1 %v2230_v34 }
0x14e5   : > { %v3602_v29 = vpop.eup %3601  ;;  %3418 = vmatprep.subr.bf16.mxu1 %v3697_v7 }
0x14e6   : > { %v2126_v30 = vmul.f32 %v3602_v29, %v3598_v12 }
0x14e8   : > { %v2128_v27 = vpack.c.bf16 %v2126_v30, %v2126_v30 }
0x14ea   : > { %3403 = vmatmul.mubr.msk.bf16.vlgmr.msra.gmra.mrb[72].mxu0 %vm474_vm3, %v2128_v27 }
0x14eb   : > { %3413 = vmatpush3.bf16.xpose.msra.mxu0 %v2283_v31  ;;  %3414 = vmatprep.mubr.msk.bf16.mxu0 %vm3698_vm1, %v3697_v7 }
0x14ec   : > { %3424 = vmatprep.subr.bf16.mxu0 %v3697_v7 }
0x14f2   : > { %3415 = vmatmul.mubr.msk.bf16.vlgmr.msra.gmra.mrb[76].mxu0 %vm378_vm2, %v2276_v32 }
0x14f3   : > { %3426 = vmatprep.mubr.msk.bf16.mxu0 %vm3698_vm1, %v3697_v7 }
0x15b6   : > { %v2171_v35 = vpop.f32.mrb[60].mxu1 }
0x15b7   : > { %v3398_v36 = vpop.f32.mrb[61].mxu1 }
0x15b8   : > { %v2174_v37 = vpop.f32.mrb[62].mxu1 }
0x15b9   : > { %v3399_v38 = vpop.f32.mrb[63].mxu1 }
0x15bd   : > { %v2219_v40 = vpop.f32.mrb[72].mxu0 }
0x15be   : > { %v2225_v41 = vpack.c.bf16 %v2219_v40, %v2171_v35  ;;  %v3404_v42 = vpop.f32.mrb[73].mxu0 }
0x15bf   : > { %v2222_v43 = vpop.f32.mrb[74].mxu0 }
0x15c0   : > { %v3405_v46 = vpop.f32.mrb[75].mxu0  ;;  %3409 = vmatmul.mubr.msk.bf16.vlgmr.msra.gmra.mrb[64].mxu1 %vm378_vm2, %v2225_v41  ;;  %v3631_v41 = vld [vmem:[%s3818_s17] sm:$0xff] }
0x15c1   : > { %3419 = vmatpush3.bf16.xpose.msra.mxu1 %v2333_v45  ;;  %3420 = vmatprep.mubr.msk.bf16.mxu1 %vm3698_vm1, %v3697_v7  ;;  %v3632_v45 = vld [vmem:[%s3818_s17 + $0x8] sm:$0xff]  ;;  %s3639_s17 = scalar_lea.vmem %s3638_s20, 512 }
0x15c2   : > { %3430 = vmatprep.subr.bf16.mxu1 %v3697_v7  ;;  %p3641_p1 = scmp.lt.s32.totalorder %s3639_s17, %s3633_s18 }
0x15c4   : > { %p3642_p2 = por %p3641_p1, %p3640_p0 }
0x15c5   : > { %v2319_v47 = vpop.f32.mrb[76].mxu0 }
0x15c6   : > { %v3416_v48 = vpop.f32.mrb[77].mxu0  ;;  %v2375_v49 = vsel %vm474_vm3, %v2319_v47, -inf  ;;  %p3643_p3 = pnand %p3642_p2, %p3636_p13 }
0x15c7   : > { %2376 = vmax.xlane.f32.xlu0 %v2375_v49  ;;  %v2322_v51 = vpop.f32.mrb[78].mxu0 }
0x15c8   : > { %v3417_v52 = vpop.f32.mrb[79].mxu0  ;;  %3421 = vmatmul.mubr.msk.bf16.vlgmr.msra.gmra.mrb[68].mxu1 %vm378_vm2, %v2326_v50  ;;  %v3517_v51 = vld [vmem:[%s4342_s5 + $0x4] ss:$16 sps:$4 sm:$0xff]  }
0x15c9   : > { %3432 = vmatprep.mubr.msk.bf16.mxu1 %vm3698_vm1, %v3697_v7  ;;  %v3520_v52 = vld [vmem:[%s4342_s5 + $0xc] ss:$16 sps:$4 sm:$0xff]  }
0x1654   : > { %v2377_v44 = vpop.xlane.xlu0 %2376 }
0x1655   : > { %v2381_v53 = vsub.f32 %v2319_v47, %v2377_v44  ;;  %v3515_v44 = vld [vmem:[%s4342_s5] ss:$16 sps:$4 sm:$0xff]  }
0x1657   : > { %v2383_v54 = vmul.f32 1.442695, %v2381_v53  ;;  %v3518_v53 = vld [vmem:[%s4342_s5 + $0x8] ss:$16 sps:$4 sm:$0xff]  }
0x1659   : > { %3603 = vpow2.f32 %v2383_v54  ;;  %v3521_v54 = vld [vmem:[%s4342_s5 + $0x20] ss:$16 sps:$4 sm:$0xff]  }
0x1663   : > { %v3604_v55 = vpop.eup %3603 }
0x1664   : > { %v2387_v56 = vsel %vm474_vm3, %v3604_v55, 0.0 }
0x1665   : > { %2388 = vadd.xlane.f32.xlu0 %v2387_v56  ;;  %v3524_v56 = vld [vmem:[%s4342_s5 + $0x28] ss:$16 sps:$4 sm:$0xff]  }
0x1693   : > { %v2266_v57 = vpop.f32.mrb[64].mxu1 }
0x1694   : > { %v2273_v58 = vadd.f32 %v2266_v57, %v4129_v0  ;;  %v3410_v60 = vpop.f32.mrb[65].mxu1  ;;  %v3526_v57 = vld [vmem:[%s4342_s5 + $0x2c] ss:$16 sps:$4 sm:$0xff]  }
0x1695   : > { %v2269_v61 = vpop.f32.mrb[66].mxu1 }
0x1696   : > { %v2274_v62 = vadd.f32 %v2269_v61, %v4132_v3  ;;  %v3411_v63 = vpop.f32.mrb[67].mxu1 }
0x169b   : > { %v2369_v59 = vpop.f32.mrb[68].mxu1 }
0x169c   : > { %v3422_v1 = vpop.f32.mrb[69].mxu1  ;;  %v2378_v2 = vsel %vm474_vm3, %v2369_v59, -inf }
0x169d   : > { %2379 = vmax.xlane.f32.xlu1 %v2378_v2  ;;  %v2372_v4 = vpop.f32.mrb[70].mxu1 }
0x169e   : > { %v3423_v6 = vpop.f32.mrb[71].mxu1 }
0x16ae   : > { %2447 = vrot.lane.b32.xlu1 %v3847_v28, %s3721_s14 }
0x16f2   : > { %v2389_v9 = vpop.xlane.xlu0 %2388 }
0x172a   : > { %v2380_v8 = vpop.xlane.xlu1 %2379 }
0x172b   : > { %v2382_v10 = vsub.f32 %v2369_v59, %v2380_v8 }
0x172d   : > { %v2385_v11 = vmul.f32 1.442695, %v2382_v10 }
0x172e   : > { %v2448_v13 = vpop.permute.xlu1 %2447 }
0x172f   : > { %3605 = vpow2.f32 %v2385_v11  ;;  %v2453_v0 = vsel %vm504_vm4, %v2448_v13, 0  ;;  %v3527_v11 = vld [vmem:[%s4343_s6 + $0x40] sm:$0xff]  }
0x1730   : > { %3431 = vmatpush3.bf16.msra.mxu1 %v2453_v0  ;;  %3607 = vrcp.f32 %v2389_v9  ;;  %v3528_v13 = vld [vmem:[%s4343_s6] sm:$0xff]   ;;  %v3529_v0 = vld [vmem:[%s4343_s6 + $0x48] sm:$0xff]   ;;  %v3532_v9 = vld [vmem:[%s4343_s6 + $0x10] sm:$0xff]  }
0x1731   : > { %2628 = vmatprep.subr.bf16.mxu1 %v3517_v51 }
0x1739   : > { %v3606_v3 = vpop.eup %3605 }
0x173a   : > { %v2390_v5 = vsel %vm474_vm3, %v3606_v3, 0.0  ;;  %v3608_v14 = vpop.eup %3607 }
0x173b   : > { %2391 = vadd.xlane.f32.xlu0 %v2390_v5  ;;  %v2395_v28 = vmul.f32 %v3608_v14, %v3604_v55  ;;  %v3523_v55 = vld [vmem:[%s4342_s5 + $0x24] ss:$16 sps:$4 sm:$0xff]   ;;  %v3533_v14 = vld [vmem:[%s4343_s6 + $0x58] sm:$0xff]  }
0x173c   : > { %v3531_v5 = vld [vmem:[%s4343_s6 + $0x50] sm:$0xff]  }
0x173d   : > { %v2397_v15 = vpack.c.bf16 %v2395_v28, %v2395_v28  ;;  %v3535_v28 = vld [vmem:[%s4343_s6 + $0x60] sm:$0xff]  }
0x1751   : > { %2399 = vrot.lane.b32.xlu0 %v3844_v25, %s3721_s14 }
0x17c8   : > { %v2392_v16 = vpop.xlane.xlu0 %2391 }
0x17c9   : > { %3609 = vrcp.f32 %v2392_v16  ;;  %v3534_v16 = vld [vmem:[%s4343_s6 + $0x18] sm:$0xff]  }
0x17cc   : > { %v2400_v18 = vpop.permute.xlu0 %2399 }
0x17cd   : > { %v2405_v12 = vsel %vm504_vm4, %v2400_v18, 0  ;;  %v3536_v18 = vld [vmem:[%s4343_s6 + $0x20] sm:$0xff]  }
0x17ce   : > { %3425 = vmatpush3.bf16.msra.mxu0 %v2405_v12  ;;  %v3537_v12 = vld [vmem:[%s4343_s6 + $0x68] sm:$0xff]  }
0x17cf   : > { %3436 = vmatprep.subr.bf16.mxu0 %v3697_v7 }
0x17d1   : > { %3427 = vmatmul.mubr.msk.bf16.vlgmr.msra.gmra.mrb[80].mxu0 %vm474_vm3, %v2397_v15  ;;  %v3538_v15 = vld [vmem:[%s4343_s6 + $0x28] sm:$0xff]  }
0x17d2   : > { %3438 = vmatprep.mubr.msk.bf16.mxu0 %vm3698_vm1, %v3697_v7  ;;  %3437 = vmatpush3.bf16.msra.mxu0 %v2504_v17 }
0x17d3   : > { %v3610_v19 = vpop.eup %3609  ;;  %2671 = vmatprep.subr.bf16.mxu0 %v3520_v52 }
0x17d4   : > { %v2396_v25 = vmul.f32 %v3610_v19, %v3606_v3  ;;  %v3530_v3 = vld [vmem:[%s4343_s6 + $0x8] sm:$0xff]   ;;  %v3539_v19 = vld [vmem:[%s4343_s6 + $0x70] sm:$0xff]  }
0x17d6   : > { %v2398_v21 = vpack.c.bf16 %v2396_v25, %v2396_v25  ;;  %v3540_v25 = vld [vmem:[%s4343_s6 + $0x30] sm:$0xff]  }
0x17d8   : > { %3433 = vmatmul.mubr.msk.bf16.vlgmr.msra.gmra.mrb[72].mxu1 %vm474_vm3, %v2398_v21  ;;  %v3541_v21 = vld [vmem:[%s4343_s6 + $0x78] sm:$0xff]  }
0x17d9   : > { %2629 = vmatpush1.bf16.msra.mxu1 %v3515_v44 }
0x17da   : > { %2630 = vmatprep.subr.bf16.mxu1 %v3523_v55 }
0x17dd   : > { %2631 = vmatpush1.bf16.msra.mxu1 %v3521_v54 }
0x17de   : > { %3172 = vmatprep.subr.bf16.mxu1 %v3527_v11 }
0x18a4   : > { %v2441_v20 = vpop.f32.mrb[80].mxu0 }
0x18a5   : > { %v3428_v26 = vpop.f32.mrb[81].mxu0 }
0x18a6   : > { %v2444_v29 = vpop.f32.mrb[82].mxu0 }
0x18a7   : > { %v3429_v30 = vpop.f32.mrb[83].mxu0 }
0x18ab   : > { %v2489_v23 = vpop.f32.mrb[72].mxu1 }
0x18ac   : > { %v2495_v27 = vpack.c.bf16 %v2489_v23, %v2441_v20  ;;  %v3434_v7 = vpop.f32.mrb[73].mxu1 }
0x18ad   : > { %v2492_v31 = vpop.f32.mrb[74].mxu1 }
0x18ae   : > { %v3435_v32 = vpop.f32.mrb[75].mxu1  ;;  %3439 = vmatmul.mubr.msk.bf16.vlgmr.msra.gmra.mrb[84].mxu0 %vm378_vm2, %v2495_v27 }
0x18af   : > { %2672 = vmatpush1.bf16.msra.mxu0 %v3518_v53 }
0x18b0   : > { %2673 = vmatprep.subr.bf16.mxu0 %v3526_v57 }
0x18b3   : > { %2674 = vmatpush1.bf16.msra.mxu0 %v3524_v56 }
0x1981   : > { %v2540_v34 = vpop.f32.mrb[84].mxu0 }
0x1982   : > { %v2547_v35 = vadd.f32 %v2540_v34, %v2273_v58  ;;  %v3440_v36 = vpop.f32.mrb[85].mxu0  ;;  %v3722_v58 = vmov 0  }
0x1983   : > { %v2543_v37 = vpop.f32.mrb[86].mxu0  ;;  %2660 = vmatprep.mubr.bf16.mxu1 %v3722_v58  ;;  %2703 = vmatprep.mubr.bf16.mxu0 %v3722_v58 }
0x1984   : > { %v2556_v38 = vadd.f32 %v3052_v33, %v2547_v35  ;;  %v2548_v39 = vadd.f32 %v2543_v37, %v2274_v62  ;;  %v3441_v40 = vpop.f32.mrb[87].mxu0 }
0x1986   : > { %v4196_v42 = vadd.f32 %v3631_v41, %v2556_v38  ;;  %v2557_v43 = vadd.f32 %v3052_v33, %v2548_v39 }
0x1988   : > { %v4199_v46 = vadd.f32 %v3632_v45, %v2557_v43  ;;  %v2560_v47 = vmul.f32 %v4196_v42, %v4196_v42 }
0x198a   : > { %v2562_v48 = vsel %vm285_vm0, %v2560_v47, 0.0  ;;  %v2561_v49 = vmul.f32 %v4199_v46, %v4199_v46 }
0x198b   : > { %2563 = vadd.xlane.f32.xlu1 %v2562_v48 }
0x198c   : > { %v2565_v50 = vsel %vm285_vm0, %v2561_v49, 0.0 }
0x198d   : > { %2566 = vadd.xlane.f32.xlu0 %v2565_v50 }
0x1a18   : > { %v2564_v60 = vpop.xlane.xlu1 %2563 }
0x1a19   : > { %v2568_v61 = vmul.f32 0.03125, %v2564_v60 }
0x1a1a   : > { %v2567_v62 = vpop.xlane.xlu0 %2566 }
0x1a1b   : > { %v2570_v63 = vadd.f32 1e-06, %v2568_v61  ;;  %v2569_v59 = vmul.f32 0.03125, %v2567_v62 }
0x1a1d   : > { %3611 = vrsqrt.f32 %v2570_v63  ;;  %v2571_v1 = vadd.f32 1e-06, %v2569_v59 }
0x1a1f   : > { %3613 = vrsqrt.f32 %v2571_v1 }
0x1a27   : > { %v3612_v2 = vpop.eup %3611 }
0x1a28   : > { %v2574_v6 = vmul.f32 %v3612_v2, %v4196_v42 }
0x1a29   : > { %v3614_v4 = vpop.eup %3613 }
0x1a2a   : > { %v2575_v8 = vmul.f32 %v3614_v4, %v4199_v46 }
0x1a2c   : > { %v2576_v10 = vpack.c.bf16 %v2575_v8, %v2574_v6 }
0x1a2e   : > { %3061 = vmatmul.mubr.msk.bf16.vlgmr.msra.gmra.mrb[76].mxu1 %vm285_vm0, %v2576_v10  ;;  %3062 = vmatmul.mubr.msk.bf16.vlgmr.msra.gmra.mrb[88].mxu0 %vm285_vm0, %v2576_v10 }
0x1a2f   : > { %3173 = vmatpush3.bf16.msra.mxu1 %v3528_v13 }
0x1a30   : > { %3174 = vmatprep.subr.bf16.mxu1 %v3529_v0 }
0x1a33   : > { %3175 = vmatpush3.bf16.msra.mxu1 %v3530_v3 }
0x1a34   : > { %3176 = vmatprep.subr.bf16.mxu1 %v3531_v5 }
0x1a37   : > { %3177 = vmatpush3.bf16.msra.mxu1 %v3532_v9 }
0x1a38   : > { %3178 = vmatprep.subr.bf16.mxu1 %v3533_v14 }
0x1a3b   : > { %3179 = vmatpush3.bf16.msra.mxu1 %v3534_v16 }
0x1a3c   : > { %3180 = vmatprep.subr.bf16.mxu1 %v3535_v28 }
0x1a3f   : > { %3181 = vmatpush3.bf16.msra.mxu1 %v3536_v18 }
0x1a40   : > { %3182 = vmatprep.subr.bf16.mxu1 %v3537_v12 }
0x1a43   : > { %3183 = vmatpush3.bf16.msra.mxu1 %v3538_v15 }
0x1a44   : > { %3184 = vmatprep.subr.bf16.mxu1 %v3539_v19 }
0x1a47   : > { %3185 = vmatpush3.bf16.msra.mxu1 %v3540_v25 }
0x1a48   : > { %3186 = vmatprep.subr.bf16.mxu1 %v3541_v21 }
0x1a4b   : > { %3187 = vmatpush3.bf16.msra.mxu1 %v3542_v22 }
0x1b01   : > { %v2662_v24 = vpop.f32.mrb[76].mxu1  ;;  %v2705_v17 = vpop.f32.mrb[88].mxu0 }
0x1b02   : > { %v3063_v20 = vmul.f32 -1.442695, %v2662_v24  ;;  %v2664_v26 = vpop.f32.mrb[77].mxu1  ;;  %v2707_v29 = vpop.f32.mrb[89].mxu0 }
0x1b03   : > { %v3064_v30 = vmul.f32 -1.442695, %v2664_v26  ;;  %v2666_v23 = vpop.f32.mrb[78].mxu1  ;;  %v2709_v27 = vpop.f32.mrb[90].mxu0 }
0x1b04   : > { %3615 = vpow2.f32 %v3063_v20  ;;  %v3065_v7 = vmul.f32 -1.442695, %v2666_v23  ;;  %v2668_v31 = vpop.f32.mrb[79].mxu1  ;;  %v2711_v32 = vpop.f32.mrb[91].mxu0 }
0x1b05   : > { %3617 = vpow2.f32 %v3064_v30  ;;  %v3066_v34 = vmul.f32 -1.442695, %v2668_v31 }
0x1b06   : > { %3619 = vpow2.f32 %v3065_v7 }
0x1b07   : > { %3621 = vpow2.f32 %v3066_v34 }
0x1b0e   : > { %v3616_v33 = vpop.eup %3615 }
0x1b0f   : > { %v3618_v35 = vpop.eup %3617  ;;  %v2726_v36 = vadd.f32 1.0, %v3616_v33 }
0x1b10   : > { %v3620_v37 = vpop.eup %3619  ;;  %v2727_v38 = vadd.f32 1.0, %v3618_v35 }
0x1b11   : > { %v3622_v39 = vpop.eup %3621  ;;  %3623 = vrcp.f32 %v2726_v36  ;;  %v2728_v40 = vadd.f32 1.0, %v3620_v37 }
0x1b12   : > { %3625 = vrcp.f32 %v2727_v38  ;;  %v2729_v41 = vadd.f32 1.0, %v3622_v39 }
0x1b13   : > { %3627 = vrcp.f32 %v2728_v40 }
0x1b14   : > { %3629 = vrcp.f32 %v2729_v41 }
0x1b1b   : > { %v3624_v43 = vpop.eup %3623 }
0x1b1c   : > { %v3626_v45 = vpop.eup %3625  ;;  %v2738_v47 = vmul.f32 %v3624_v43, %v2662_v24 }
0x1b1d   : > { %v3628_v48 = vpop.eup %3627  ;;  %v2739_v49 = vmul.f32 %v3626_v45, %v2664_v26 }
0x1b1e   : > { %v3630_v50 = vpop.eup %3629  ;;  %v2742_v51 = vmul.f32 %v2738_v47, %v2705_v17  ;;  %v2740_v52 = vmul.f32 %v3628_v48, %v2666_v23 }
0x1b1f   : > { %v2743_v44 = vmul.f32 %v2739_v49, %v2707_v29  ;;  %v2741_v53 = vmul.f32 %v3630_v50, %v2668_v31 }
0x1b20   : > { %v2744_v54 = vmul.f32 %v2740_v52, %v2709_v27 }
0x1b21   : > { %v2745_v55 = vmul.f32 %v2741_v53, %v2711_v32 }
0x1b22   : > { %v2746_v56 = vpack.c.bf16 %v2744_v54, %v2742_v51 }
0x1b23   : > { %v2747_v57 = vpack.c.bf16 %v2745_v55, %v2743_v44 }
0x1b25   : > { %2908 = vmatprep.mubr.bf16.mxu1 %v2747_v57 }
0x1b26   : > { %2909 = vmatmul.mubr.bf16.vlgmr.msra.gmra.mrb[80].mxu1 %v2746_v56 }
0x1bf9   : > { %v3188_v58 = vpop.f32.mrb[80].mxu1 }
0x1bfa   : > { %v3189_v60 = vpop.f32.mrb[81].mxu1 }
0x1bfb   : > { %v3190_v61 = vadd.f32 %v3189_v60, %v3188_v58  ;;  %v3191_v62 = vpop.f32.mrb[82].mxu1 }
0x1bfc   : > { %v3192_v63 = vpop.f32.mrb[83].mxu1 }
0x1bfd   : > { %v2917_v59 = vadd.f32 %v3190_v61, %v4196_v42  ;;  %v3193_v1 = vadd.f32 %v3192_v63, %v3191_v62 }
0x1bff   : > { %2919 = vst.msk [vmem:[%s272_s8] sm:$0xff] %vm285_vm0, %v2917_v59  ;;  %v2918_v2 = vadd.f32 %v3193_v1, %v4199_v46 }
0x1c01   : > { %2920 = vst.msk [vmem:[%s272_s8 + $0x8] sm:$0xff] %vm285_vm0, %v2918_v2 }
0x1c02   : > { %3646 = shalt.err (!%p3643_p3)
}
0x1c03   : > { %s3647_s21 = scalar_lea.hbm %s4289_s16, 256  ;;  %s3651_s29 = scalar_lea.hbm %s4344_s7, 512 }
0x1c04   : > { %p3648_p4 = scmp.ne.s32.totalorder %s4289_s16, %s3647_s21  ;;  %p3652_p9 = scmp.lt.u32.totalorder %s4289_s16, %s4344_s7 }
0x1c05   : > { %p3653_p10 = scmp.lt.u32.totalorder %s3651_s29, %s3647_s21  ;;  %p3655_p12 = scmp.lt.u32.totalorder %s3647_s21, %s4289_s16 }
0x1c06   : > { %p3649_p7 = pnand %p3648_p4, %p3804_p5 }
0x1c07   : > { %p3654_p11 = por %p3653_p10, %p3652_p9 }
0x1c08   : > { %p3650_p8 = pneg %p3649_p7 }
0x1c09   : > { %p3656_p13 = por %p3655_p12, %p3654_p11 }
0x1c0b   : > { %p3657_p0 = pnand %p3656_p13, %p3650_p8 }
0x1c0d   : > { %3660 = shalt.err (!%p3657_p0)
}
0x1c0e   : > { %s3724_s14 = smov 128   ;;  %s3725_s15 = smov 8  }
0x1c0f   : > { %3442 = dma.vmem_to_hbm [thread:$0]  (%p3804_p5), %s4291_s9, 256, %s4289_s16, %s4296_s28, %s3724_s14, %s3724_s14, %s3725_s15  }
0x1c10 PF: > { %p3448_p1 = scmp.ge.s32.totalorder %s3695_s27, 2  ;;  %s2950_s18 = sand.u32 1, %s3683_s24  }
0x1c11   : > { %s2951_s19 = scalar_lea.sflag [#allocation3], %s2950_s18 }
0x1c12   : > { %p3445_p2 = pnand %p3448_p1, %p3808_p6 }
0x1c14   : > { %3678 = dma.done.wait (!%p3445_p2), %s2951_s19, 256  }
0x1c15   : > { %3680 = vsyncadd (!%p3445_p2), %s2951_s19, 4294967040  ;;  %p17_p3 = scmp.ge.s32.totalorder %s3791_s30, 4   ;;  %s4347_s24 = smov %s3687_s25 }
0x1c16   : > { %s4348_s25 = smov %s3691_s26  ;;  %s4349_s26 = smov %s3802_s10 }
0x1c17   : > { %s4350_s27 = smov %s3791_s30  ;;  %19 = sbr.rel (!%p17_p3) target bundleno = 3 (0x3), region = 83 }
0x1c1e   :  { %2956 = vsyncpa [#allocation3], 1 }
0x1c1f   :  { %2958 = vsyncpa [#allocation3 + $0x1], 1 }

</bundles_post_ra>
